<compile_context>
chip_gen: v7x
topology: tpu7x:2x2x1
jax: 0.10.0
libtpu: 0.0.40
codegen_flags: <defaults>
</compile_context>

<pallas_src>
import functools
import math

import jax
import jax.numpy as jnp
from jax import lax
from jax.experimental import pallas as pl
from jax.experimental.pallas import tpu as pltpu


def _cdiv(a, b):
    return (a + b - 1) // b


def _ccc_stats_kernel(yt_ref, yp_ref, out_ref,
                      st_acc, sp_acc, stt_acc, spp_acc, stp_acc,
                      *, label_dim, rows_total, row_hunk):
    """Accumulate per-(group, channel) raw sufficient statistics.

    Inputs stream as (GB, TR, L) tiles over the row grid axis; lane j always
    carries channel j % label_dim (L % label_dim == 0).  Each step folds the TR
    rows into vreg-resident (GB, RH, L) partials and does a single small +=
    into the VMEM accumulators, so the vector-store slot never binds.  The
    cross-lane / cross-sublane work happens once per group block in finalize.
    """
    s = pl.program_id(1)
    n_steps = pl.num_programs(1)
    GB, TR, L = yt_ref.shape
    RH = row_hunk
    chunks = TR // RH
    mask_rows = (rows_total % TR) != 0      # only the last row block can be partial

    @pl.when(s == 0)
    def _init():
        st_acc[...] = jnp.zeros_like(st_acc)
        sp_acc[...] = jnp.zeros_like(sp_acc)
        stt_acc[...] = jnp.zeros_like(stt_acc)
        spp_acc[...] = jnp.zeros_like(spp_acc)
        stp_acc[...] = jnp.zeros_like(stp_acc)

    row0 = s * TR
    if mask_rows:
        row_iota = lax.broadcasted_iota(jnp.int32, (GB, RH, L), 1)   # hoisted

    def chunk_body(c, carry):
        a_t, a_p, a_tt, a_pp, a_tp = carry
        off = c * RH
        if RH % 8 == 0:
            off = pl.multiple_of(off, RH)
        t = yt_ref[:, pl.ds(off, RH), :].astype(jnp.float32)
        p = yp_ref[:, pl.ds(off, RH), :].astype(jnp.float32)
        if mask_rows:
            # Edge row block: only in-bounds rows were DMA'd; zero the stale rest
            # before accumulating.
            valid = (row0 + c * RH + row_iota) < rows_total
            t = jnp.where(valid, t, 0.0)
            p = jnp.where(valid, p, 0.0)
        return (a_t + t, a_p + p, a_tt + t * t, a_pp + p * p, a_tp + t * p)

    zero = jnp.zeros((GB, RH, L), jnp.float32)
    init = (zero, zero, zero, zero, zero)
    if chunks == 1:
        p_t, p_p, p_tt, p_pp, p_tp = chunk_body(0, init)
    else:
        p_t, p_p, p_tt, p_pp, p_tp = lax.fori_loop(
            0, chunks, chunk_body, init, unroll=(chunks <= 8))

    st_acc[...] += p_t
    sp_acc[...] += p_p
    stt_acc[...] += p_tt
    spp_acc[...] += p_pp
    stp_acc[...] += p_tp

    @pl.when(s == n_steps - 1)
    def _finalize():
        C = label_dim
        if C > 1:
            lane_ch = lax.broadcasted_iota(jnp.int32, (L, C), 0) % C
            col = lax.broadcasted_iota(jnp.int32, (L, C), 1)
            onehot = (lane_ch == col).astype(jnp.float32)            # (L, C)
        for k, acc in enumerate((st_acc, sp_acc, stt_acc, spp_acc, stp_acc)):
            folded = jnp.sum(acc[...], axis=1)                       # (GB, L)
            if C > 1:
                out_ref[:, k, :] = jnp.dot(
                    folded, onehot, preferred_element_type=jnp.float32)  # (GB, C)
            else:
                out_ref[:, k, :] = jnp.sum(folded, axis=1, keepdims=True)


def _pick_lane_width(n_samples, label_dim, lane_cap):
    """Largest L = label_dim*k (k | n_samples) with 128 <= L <= lane_cap.

    If such L exists the (G, M) stream reshapes to (G, rows, L) with zero
    copies (M % L == 0).  Otherwise fall back to a lane-dense width (multiple
    of lcm(C, 128)); the main region is then sliced once and the < L tail is
    folded in the plain-JAX epilogue.
    """
    C = label_dim
    kmax = min(lane_cap // C, n_samples)
    for k in range(kmax, 0, -1):
        L = C * k
        if L < 128:
            break
        if n_samples % k == 0:
            return L, True
    base = (C * 128) // math.gcd(C, 128)          # lcm(C, 128)
    return base * max(1, lane_cap // base), False


@functools.partial(jax.jit,
                   static_argnames=("label_dim", "include_batch_dim", "tile_rows"))
def ccc_loss(y_pred, y_true, label_dim=1, include_batch_dim=True, tile_rows=None):
    assert y_pred.ndim == 2, "only 2-dim (B, T*C) or (B, C) input is supported"
    assert y_pred.shape == y_true.shape
    B = y_pred.shape[0]
    C = int(label_dim)

    if include_batch_dim:
        G = 1
        M = y_pred.shape[0] * y_pred.shape[1]
    else:
        G = B
        M = y_pred.shape[1]
        assert (M // C) > 1, "video-level task requires include_batch_dim=True"
    assert M % C == 0, "row length must be a multiple of label_dim"
    N = M // C                                     # samples per (group, channel)

    yt_flat = y_true.reshape(G, M)
    yp_flat = y_pred.reshape(G, M)

    # ---- tile planning ----------------------------------------------------
    itemsize = jnp.dtype(y_pred.dtype).itemsize
    sub = max(8, 32 // max(1, itemsize))           # sublane granularity (8 f32, 16 bf16)

    # Group blocking: bounds VMEM for include_batch_dim=False with large B.
    gb_cap = 1 if G == 1 else 4
    GB = 1
    for d in range(min(G, gb_cap), 0, -1):         # largest divisor of G -> no partial
        if G % d == 0:                             # group blocks, no group masking
            GB = d
            break
    GP = G // GB

    # Lane width: keep the 5 per-step (GB, sub, L) f32 partials vreg-resident.
    lane_cap = max(128, (4096 // sub) // GB)
    L, _exact = _pick_lane_width(N, C, lane_cap)
    rows = M // L                                  # full L-wide rows per group
    main = rows * L

    stats = jnp.zeros((G, 5, C), jnp.float32)      # [sum_t, sum_p, sum_tt, sum_pp, sum_tp]

    if rows > 0:
        if rows < sub:
            TR, RH = rows, rows                    # single full-height block
        else:
            if tile_rows is None:
                target = 4 << 20                   # ~4 MiB of HBM per input per step
                tr_budget = (target // (GB * L * itemsize)) // sub * sub
            else:
                tr_budget = (int(tile_rows) // sub) * sub
            tr_budget = max(sub, tr_budget)
            TR = min(tr_budget, (rows // sub) * sub)
            RH = sub
        S = _cdiv(rows, TR)

        if main == M:
            yt_main = yt_flat.reshape(G, rows, L)      # pure reshape: no HBM copy
            yp_main = yp_flat.reshape(G, rows, L)
        else:
            # TODO(synk): M % L != 0 -> this prefix slice costs one extra copy of
            # the main region; the < L tail is folded in the JAX epilogue below.
            yt_main = yt_flat[:, :main].reshape(G, rows, L)
            yp_main = yp_flat[:, :main].reshape(G, rows, L)

        in_spec = pl.BlockSpec((GB, TR, L), lambda gp, s: (gp, s, 0))
        out_spec = pl.BlockSpec((GB, 5, C), lambda gp, s: (gp, 0, 0))

        tile_bytes = GB * TR * L * itemsize
        acc_bytes = 5 * GB * RH * L * 4
        vmem_limit = int(min(max(32 << 20, 4 * tile_bytes + acc_bytes + (8 << 20)),
                             56 << 20))

        stats = pl.pallas_call(
            functools.partial(_ccc_stats_kernel, label_dim=C,
                              rows_total=rows, row_hunk=RH),
            out_shape=jax.ShapeDtypeStruct((G, 5, C), jnp.float32),
            grid_spec=pltpu.PrefetchScalarGridSpec(
                num_scalar_prefetch=0,
                grid=(GP, S),
                in_specs=[in_spec, in_spec],
                out_specs=out_spec,
                scratch_shapes=[pltpu.VMEM((GB, RH, L), jnp.float32)] * 5,
            ),
            # TODO(synk): on v7x, shard the row axis across the 2 TensorCores with
            # pltpu.CORE_PARALLEL / pl.core_map once generation detection is added.
            compiler_params=pltpu.CompilerParams(
                dimension_semantics=("parallel", "arbitrary"),
                vmem_limit_bytes=vmem_limit),
        )(yt_main, yp_main)

    # ---- tail (< L elements per group) + tiny epilogue ----------------------
    if main < M:
        tn = (M - main) // C
        t = yt_flat[:, main:].reshape(G, tn, C).astype(jnp.float32)
        p = yp_flat[:, main:].reshape(G, tn, C).astype(jnp.float32)
        tail = jnp.stack([t.sum(1), p.sum(1), (t * t).sum(1),
                          (p * p).sum(1), (t * p).sum(1)], axis=1)     # (G, 5, C)
        stats = stats + tail

    n = jnp.float32(N)
    sum_t, sum_p = stats[:, 0, :], stats[:, 1, :]
    sum_tt, sum_pp, sum_tp = stats[:, 2, :], stats[:, 3, :], stats[:, 4, :]
    mean_t = sum_t / n
    mean_p = sum_p / n
    # TODO(synk): raw-moment accumulation (E[x^2] - E[x]^2) can cancel badly when
    # |mean| >> std; switch to a shifted / Chan-style merge if such inputs appear.
    var_t = sum_tt / n - mean_t * mean_t           # biased variance (matches torch)
    var_p = sum_pp / n - mean_p * mean_p
    cov = sum_tp / n - mean_t * mean_p             # biased covariance
    ccc = jnp.mean(2.0 * cov / (var_t + var_p + (mean_t - mean_p) ** 2))
    return (1.0 - ccc).astype(jnp.float32)


def _ccc_loss_ref(y_pred, y_true, label_dim=1, include_batch_dim=True):
    """Plain-JAX two-pass reference mirroring the PyTorch forward exactly."""
    b = y_pred.shape[0]
    g = 1 if include_batch_dim else b
    yp = y_pred.reshape(g, -1, label_dim).astype(jnp.float32)
    yt = y_true.reshape(g, -1, label_dim).astype(jnp.float32)
    mt = jnp.mean(yt, axis=1, keepdims=True)
    mp = jnp.mean(yp, axis=1, keepdims=True)
    vt = jnp.mean((yt - mt) ** 2, axis=1, keepdims=True)
    vp = jnp.mean((yp - mp) ** 2, axis=1, keepdims=True)
    cov = jnp.mean((yt - mt) * (yp - mp), axis=1, keepdims=True)
    ccc = jnp.mean(2.0 * cov / (vt + vp + (mt - mp) ** 2))
    return 1.0 - ccc


if __name__ == "__main__":
    root = jax.random.PRNGKey(0)

    cases = [
        # (B,    T, C, include_batch_dim, dtype,        tile_rows)
        (2, 3100, 2, True,  jnp.float32, 8),     # multi-step grid + masked edge row block
        (4, 4500, 2, True,  jnp.float32, None),  # auto tile, chunked in-step partials
        (2,  509, 2, False, jnp.float32, None),  # per-video groups, sliced main + JAX tail
        (2, 2000, 1, True,  jnp.bfloat16, None), # default label_dim, bf16 in-kernel upcast
    ]
    for idx, (B, T, C, inc, dtype, tr) in enumerate(cases):
        k1, k2 = jax.random.split(jax.random.fold_in(root, idx))
        y_pred = jax.random.normal(k1, (B, T * C), dtype=jnp.float32).astype(dtype)
        y_true = jax.random.normal(k2, (B, T * C), dtype=jnp.float32).astype(dtype)
        out = jax.block_until_ready(
            ccc_loss(y_pred, y_true, label_dim=C, include_batch_dim=inc, tile_rows=tr))
        ref = _ccc_loss_ref(y_pred, y_true, label_dim=C, include_batch_dim=inc)
        assert jnp.allclose(out, ref, atol=2e-4, rtol=2e-4), (idx, out, ref)

    print("KERNEL_OK")
</pallas_src>

<mosaic_0001>
module attributes {stable_mosaic.version = 11 : i64} {
  func.func @_ccc_stats_kernel(%arg0: i32, %arg1: i32, %arg2: memref<1x8x496xf32, #tpu.memory_space<vmem>>, %arg3: memref<1x8x496xf32, #tpu.memory_space<vmem>>, %arg4: memref<1x5x2xf32, #tpu.memory_space<vmem>>, %arg5: memref<1x8x496xf32, #tpu.memory_space<vmem>>, %arg6: memref<1x8x496xf32, #tpu.memory_space<vmem>>, %arg7: memref<1x8x496xf32, #tpu.memory_space<vmem>>, %arg8: memref<1x8x496xf32, #tpu.memory_space<vmem>>, %arg9: memref<1x8x496xf32, #tpu.memory_space<vmem>>) attributes {dimension_semantics = [#tpu.dimension_semantics<parallel>, #tpu.dimension_semantics<arbitrary>], iteration_bounds = array<i64: 1, 4>, scalar_prefetch = 0 : i64, scratch_operands = 5 : i64, tpu.core_type = #tpu.core_type<tc>, window_params = [{transform_indices = @transform_0, window_bounds = array<i64: 1, 8, 496>}, {transform_indices = @transform_1, window_bounds = array<i64: 1, 8, 496>}, {transform_indices = @transform_2, window_bounds = array<i64: 1, 5, 2>}]} {
    %c0_i32 = arith.constant 0 : i32
    %0 = arith.cmpi eq, %arg1, %c0_i32 : i32
    %1 = arith.extui %0 : i1 to i32
    %c0_i32_0 = arith.constant 0 : i32
    %2 = arith.cmpi ne, %1, %c0_i32_0 : i32
    scf.if %2 {
      %cst_39 = arith.constant 0.000000e+00 : f32
      %46 = vector.broadcast %cst_39 : f32 to vector<1x8x496xf32>
      %c0_40 = arith.constant 0 : index
      %c0_41 = arith.constant 0 : index
      %c0_42 = arith.constant 0 : index
      %47 = vector.load %arg5[%c0_40, %c0_41, %c0_42] : memref<1x8x496xf32, #tpu.memory_space<vmem>>, vector<1x8x496xf32>
      tpu.vector_store %arg5[%c0_40, %c0_41, %c0_42], %46 {strides = array<i32>} : memref<1x8x496xf32, #tpu.memory_space<vmem>>, vector<1x8x496xf32>,
      %cst_43 = arith.constant 0.000000e+00 : f32
      %48 = vector.broadcast %cst_43 : f32 to vector<1x8x496xf32>
      %c0_44 = arith.constant 0 : index
      %c0_45 = arith.constant 0 : index
      %c0_46 = arith.constant 0 : index
      %49 = vector.load %arg6[%c0_44, %c0_45, %c0_46] : memref<1x8x496xf32, #tpu.memory_space<vmem>>, vector<1x8x496xf32>
      tpu.vector_store %arg6[%c0_44, %c0_45, %c0_46], %48 {strides = array<i32>} : memref<1x8x496xf32, #tpu.memory_space<vmem>>, vector<1x8x496xf32>,
      %cst_47 = arith.constant 0.000000e+00 : f32
      %50 = vector.broadcast %cst_47 : f32 to vector<1x8x496xf32>
      %c0_48 = arith.constant 0 : index
      %c0_49 = arith.constant 0 : index
      %c0_50 = arith.constant 0 : index
      %51 = vector.load %arg7[%c0_48, %c0_49, %c0_50] : memref<1x8x496xf32, #tpu.memory_space<vmem>>, vector<1x8x496xf32>
      tpu.vector_store %arg7[%c0_48, %c0_49, %c0_50], %50 {strides = array<i32>} : memref<1x8x496xf32, #tpu.memory_space<vmem>>, vector<1x8x496xf32>,
      %cst_51 = arith.constant 0.000000e+00 : f32
      %52 = vector.broadcast %cst_51 : f32 to vector<1x8x496xf32>
      %c0_52 = arith.constant 0 : index
      %c0_53 = arith.constant 0 : index
      %c0_54 = arith.constant 0 : index
      %53 = vector.load %arg8[%c0_52, %c0_53, %c0_54] : memref<1x8x496xf32, #tpu.memory_space<vmem>>, vector<1x8x496xf32>
      tpu.vector_store %arg8[%c0_52, %c0_53, %c0_54], %52 {strides = array<i32>} : memref<1x8x496xf32, #tpu.memory_space<vmem>>, vector<1x8x496xf32>,
      %cst_55 = arith.constant 0.000000e+00 : f32
      %54 = vector.broadcast %cst_55 : f32 to vector<1x8x496xf32>
      %c0_56 = arith.constant 0 : index
      %c0_57 = arith.constant 0 : index
      %c0_58 = arith.constant 0 : index
      %55 = vector.load %arg9[%c0_56, %c0_57, %c0_58] : memref<1x8x496xf32, #tpu.memory_space<vmem>>, vector<1x8x496xf32>
      tpu.vector_store %arg9[%c0_56, %c0_57, %c0_58], %54 {strides = array<i32>} : memref<1x8x496xf32, #tpu.memory_space<vmem>>, vector<1x8x496xf32>,
    } else {
    }
    %c8_i32 = arith.constant 8 : i32
    %3 = arith.muli %arg1, %c8_i32 : i32
    %4 = tpu.iota {dimensions = array<i32: 1>} : vector<1x8x496xi32>
    %cst = arith.constant 0.000000e+00 : f32
    %5 = vector.broadcast %cst : f32 to vector<1x8x496xf32>
    %c0_i32_1 = arith.constant 0 : i32
    %6 = tpu.assume_multiple %c0_i32_1, 8 : i32
    %c0 = arith.constant 0 : index
    %7 = arith.index_cast %6 : i32 to index
    %c0_2 = arith.constant 0 : index
    %8 = vector.load %arg2[%c0, %7, %c0_2] : memref<1x8x496xf32, #tpu.memory_space<vmem>>, vector<1x8x496xf32>
    %c0_3 = arith.constant 0 : index
    %9 = arith.index_cast %6 : i32 to index
    %c0_4 = arith.constant 0 : index
    %10 = vector.load %arg3[%c0_3, %9, %c0_4] : memref<1x8x496xf32, #tpu.memory_space<vmem>>, vector<1x8x496xf32>
    %c0_i32_5 = arith.constant 0 : i32
    %11 = arith.addi %3, %c0_i32_5 : i32
    %12 = vector.broadcast %11 : i32 to vector<1x8x496xi32>
    %13 = arith.addi %12, %4 : vector<1x8x496xi32>
    %c25_i32 = arith.constant 25 : i32
    %14 = vector.broadcast %c25_i32 : i32 to vector<1x8x496xi32>
    %15 = arith.cmpi slt, %13, %14 : vector<1x8x496xi32>
    %cst_6 = arith.constant 0.000000e+00 : f32
    %16 = vector.broadcast %cst_6 : f32 to vector<1x8x496xf32>
    %17 = arith.select %15, %8, %16 : vector<1x8x496xi1>, vector<1x8x496xf32>
    %cst_7 = arith.constant 0.000000e+00 : f32
    %18 = vector.broadcast %cst_7 : f32 to vector<1x8x496xf32>
    %19 = arith.select %15, %10, %18 : vector<1x8x496xi1>, vector<1x8x496xf32>
    %20 = arith.addf %5, %17 : vector<1x8x496xf32>
    %21 = arith.addf %5, %19 : vector<1x8x496xf32>
    %22 = arith.mulf %17, %17 : vector<1x8x496xf32>
    %23 = arith.addf %5, %22 : vector<1x8x496xf32>
    %24 = arith.mulf %19, %19 : vector<1x8x496xf32>
    %25 = arith.addf %5, %24 : vector<1x8x496xf32>
    %26 = arith.mulf %17, %19 : vector<1x8x496xf32>
    %27 = arith.addf %5, %26 : vector<1x8x496xf32>
    %c0_8 = arith.constant 0 : index
    %c0_9 = arith.constant 0 : index
    %c0_10 = arith.constant 0 : index
    %28 = vector.load %arg5[%c0_8, %c0_9, %c0_10] : memref<1x8x496xf32, #tpu.memory_space<vmem>>, vector<1x8x496xf32>
    %29 = arith.addf %28, %20 : vector<1x8x496xf32>
    %c0_11 = arith.constant 0 : index
    %c0_12 = arith.constant 0 : index
    %c0_13 = arith.constant 0 : index
    %30 = vector.load %arg5[%c0_11, %c0_12, %c0_13] : memref<1x8x496xf32, #tpu.memory_space<vmem>>, vector<1x8x496xf32>
    tpu.vector_store %arg5[%c0_11, %c0_12, %c0_13], %29 {strides = array<i32>} : memref<1x8x496xf32, #tpu.memory_space<vmem>>, vector<1x8x496xf32>,
    %c0_14 = arith.constant 0 : index
    %c0_15 = arith.constant 0 : index
    %c0_16 = arith.constant 0 : index
    %31 = vector.load %arg6[%c0_14, %c0_15, %c0_16] : memref<1x8x496xf32, #tpu.memory_space<vmem>>, vector<1x8x496xf32>
    %32 = arith.addf %31, %21 : vector<1x8x496xf32>
    %c0_17 = arith.constant 0 : index
    %c0_18 = arith.constant 0 : index
    %c0_19 = arith.constant 0 : index
    %33 = vector.load %arg6[%c0_17, %c0_18, %c0_19] : memref<1x8x496xf32, #tpu.memory_space<vmem>>, vector<1x8x496xf32>
    tpu.vector_store %arg6[%c0_17, %c0_18, %c0_19], %32 {strides = array<i32>} : memref<1x8x496xf32, #tpu.memory_space<vmem>>, vector<1x8x496xf32>,
    %c0_20 = arith.constant 0 : index
    %c0_21 = arith.constant 0 : index
    %c0_22 = arith.constant 0 : index
    %34 = vector.load %arg7[%c0_20, %c0_21, %c0_22] : memref<1x8x496xf32, #tpu.memory_space<vmem>>, vector<1x8x496xf32>
    %35 = arith.addf %34, %23 : vector<1x8x496xf32>
    %c0_23 = arith.constant 0 : index
    %c0_24 = arith.constant 0 : index
    %c0_25 = arith.constant 0 : index
    %36 = vector.load %arg7[%c0_23, %c0_24, %c0_25] : memref<1x8x496xf32, #tpu.memory_space<vmem>>, vector<1x8x496xf32>
    tpu.vector_store %arg7[%c0_23, %c0_24, %c0_25], %35 {strides = array<i32>} : memref<1x8x496xf32, #tpu.memory_space<vmem>>, vector<1x8x496xf32>,
    %c0_26 = arith.constant 0 : index
    %c0_27 = arith.constant 0 : index
    %c0_28 = arith.constant 0 : index
    %37 = vector.load %arg8[%c0_26, %c0_27, %c0_28] : memref<1x8x496xf32, #tpu.memory_space<vmem>>, vector<1x8x496xf32>
    %38 = arith.addf %37, %25 : vector<1x8x496xf32>
    %c0_29 = arith.constant 0 : index
    %c0_30 = arith.constant 0 : index
    %c0_31 = arith.constant 0 : index
    %39 = vector.load %arg8[%c0_29, %c0_30, %c0_31] : memref<1x8x496xf32, #tpu.memory_space<vmem>>, vector<1x8x496xf32>
    tpu.vector_store %arg8[%c0_29, %c0_30, %c0_31], %38 {strides = array<i32>} : memref<1x8x496xf32, #tpu.memory_space<vmem>>, vector<1x8x496xf32>,
    %c0_32 = arith.constant 0 : index
    %c0_33 = arith.constant 0 : index
    %c0_34 = arith.constant 0 : index
    %40 = vector.load %arg9[%c0_32, %c0_33, %c0_34] : memref<1x8x496xf32, #tpu.memory_space<vmem>>, vector<1x8x496xf32>
    %41 = arith.addf %40, %27 : vector<1x8x496xf32>
    %c0_35 = arith.constant 0 : index
    %c0_36 = arith.constant 0 : index
    %c0_37 = arith.constant 0 : index
    %42 = vector.load %arg9[%c0_35, %c0_36, %c0_37] : memref<1x8x496xf32, #tpu.memory_space<vmem>>, vector<1x8x496xf32>
    tpu.vector_store %arg9[%c0_35, %c0_36, %c0_37], %41 {strides = array<i32>} : memref<1x8x496xf32, #tpu.memory_space<vmem>>, vector<1x8x496xf32>,
    %c3_i32 = arith.constant 3 : i32
    %43 = arith.cmpi eq, %arg1, %c3_i32 : i32
    %44 = arith.extui %43 : i1 to i32
    %c0_i32_38 = arith.constant 0 : i32
    %45 = arith.cmpi ne, %44, %c0_i32_38 : i32
    scf.if %45 {
      %46 = tpu.iota {dimensions = array<i32: 0>} : vector<496x2xi32>
      %c2_i32 = arith.constant 2 : i32
      %c0_i32_39 = arith.constant 0 : i32
      %47 = arith.cmpi eq, %c2_i32, %c0_i32_39 : i32
      %c1_i32 = arith.constant 1 : i32
      %48 = arith.select %47, %c1_i32, %c2_i32 : i32
      %49 = vector.broadcast %48 : i32 to vector<496x2xi32>
      %50 = arith.remsi %46, %49 : vector<496x2xi32>
      %c0_i32_40 = arith.constant 0 : i32
      %51 = vector.broadcast %c0_i32_40 : i32 to vector<496x2xi32>
      %52 = arith.cmpi ne, %50, %51 : vector<496x2xi32>
      %c0_i32_41 = arith.constant 0 : i32
      %53 = vector.broadcast %c0_i32_41 : i32 to vector<496x2xi32>
      %54 = arith.cmpi slt, %50, %53 : vector<496x2xi32>
      %c0_i32_42 = arith.constant 0 : i32
      %55 = arith.cmpi slt, %48, %c0_i32_42 : i32
      %56 = vector.broadcast %55 : i1 to vector<496x2xi1>
      %57 = vector.broadcast %56 : vector<496x2xi1> to vector<496x2xi1>
      %58 = arith.xori %54, %57 : vector<496x2xi1>
      %59 = arith.andi %58, %52 : vector<496x2xi1>
      %60 = vector.broadcast %48 : i32 to vector<496x2xi32>
      %61 = arith.addi %50, %60 : vector<496x2xi32>
      %62 = arith.select %59, %61, %50 : vector<496x2xi1>, vector<496x2xi32>
      %63 = tpu.iota {dimensions = array<i32: 1>} : vector<496x2xi32>
      %64 = arith.cmpi eq, %62, %63 : vector<496x2xi32>
      %65 = arith.extui %64 : vector<496x2xi1> to vector<496x2xi32>
      %66 = arith.sitofp %65 : vector<496x2xi32> to vector<496x2xf32>
      %c0_43 = arith.constant 0 : index
      %c0_44 = arith.constant 0 : index
      %c0_45 = arith.constant 0 : index
      %67 = vector.load %arg5[%c0_43, %c0_44, %c0_45] : memref<1x8x496xf32, #tpu.memory_space<vmem>>, vector<1x8x496xf32>
      %cst_46 = arith.constant dense<0.000000e+00> : vector<1x496xf32>
      %68 = vector.multi_reduction <add>, %67, %cst_46 [1] : vector<1x8x496xf32> to vector<1x496xf32>
      %cst_47 = arith.constant dense<0.000000e+00> : vector<1x2xf32>
      %69 = tpu.matmul %68, %66, %cst_47 {dimension_numbers = #tpu.dot_dimension_numbers<[1], [0], [0], [1], [0, 0, 1, 1], [], []>} : vector<1x496xf32>, vector<496x2xf32>, vector<1x2xf32> -> vector<1x2xf32>
      %c0_48 = arith.constant 0 : index
      %c0_49 = arith.constant 0 : index
      %c0_50 = arith.constant 0 : index
      %70 = vector.load %arg4[%c0_48, %c0_49, %c0_50] : memref<1x5x2xf32, #tpu.memory_space<vmem>>, vector<1x1x2xf32>
      %71 = vector.shape_cast %70 : vector<1x1x2xf32> to vector<1x2xf32>
      %72 = vector.shape_cast %69 : vector<1x2xf32> to vector<1x1x2xf32>
      tpu.vector_store %arg4[%c0_48, %c0_49, %c0_50], %72 {strides = array<i32>} : memref<1x5x2xf32, #tpu.memory_space<vmem>>, vector<1x1x2xf32>,
      %c0_51 = arith.constant 0 : index
      %c0_52 = arith.constant 0 : index
      %c0_53 = arith.constant 0 : index
      %73 = vector.load %arg6[%c0_51, %c0_52, %c0_53] : memref<1x8x496xf32, #tpu.memory_space<vmem>>, vector<1x8x496xf32>
      %cst_54 = arith.constant dense<0.000000e+00> : vector<1x496xf32>
      %74 = vector.multi_reduction <add>, %73, %cst_54 [1] : vector<1x8x496xf32> to vector<1x496xf32>
      %cst_55 = arith.constant dense<0.000000e+00> : vector<1x2xf32>
      %75 = tpu.matmul %74, %66, %cst_55 {dimension_numbers = #tpu.dot_dimension_numbers<[1], [0], [0], [1], [0, 0, 1, 1], [], []>} : vector<1x496xf32>, vector<496x2xf32>, vector<1x2xf32> -> vector<1x2xf32>
      %c0_56 = arith.constant 0 : index
      %c1 = arith.constant 1 : index
      %c0_57 = arith.constant 0 : index
      %76 = vector.load %arg4[%c0_56, %c1, %c0_57] : memref<1x5x2xf32, #tpu.memory_space<vmem>>, vector<1x1x2xf32>
      %77 = vector.shape_cast %76 : vector<1x1x2xf32> to vector<1x2xf32>
      %78 = vector.shape_cast %75 : vector<1x2xf32> to vector<1x1x2xf32>
      tpu.vector_store %arg4[%c0_56, %c1, %c0_57], %78 {strides = array<i32>} : memref<1x5x2xf32, #tpu.memory_space<vmem>>, vector<1x1x2xf32>,
      %c0_58 = arith.constant 0 : index
      %c0_59 = arith.constant 0 : index
      %c0_60 = arith.constant 0 : index
      %79 = vector.load %arg7[%c0_58, %c0_59, %c0_60] : memref<1x8x496xf32, #tpu.memory_space<vmem>>, vector<1x8x496xf32>
      %cst_61 = arith.constant dense<0.000000e+00> : vector<1x496xf32>
      %80 = vector.multi_reduction <add>, %79, %cst_61 [1] : vector<1x8x496xf32> to vector<1x496xf32>
      %cst_62 = arith.constant dense<0.000000e+00> : vector<1x2xf32>
      %81 = tpu.matmul %80, %66, %cst_62 {dimension_numbers = #tpu.dot_dimension_numbers<[1], [0], [0], [1], [0, 0, 1, 1], [], []>} : vector<1x496xf32>, vector<496x2xf32>, vector<1x2xf32> -> vector<1x2xf32>
      %c0_63 = arith.constant 0 : index
      %c2 = arith.constant 2 : index
      %c0_64 = arith.constant 0 : index
      %82 = vector.load %arg4[%c0_63, %c2, %c0_64] : memref<1x5x2xf32, #tpu.memory_space<vmem>>, vector<1x1x2xf32>
      %83 = vector.shape_cast %82 : vector<1x1x2xf32> to vector<1x2xf32>
      %84 = vector.shape_cast %81 : vector<1x2xf32> to vector<1x1x2xf32>
      tpu.vector_store %arg4[%c0_63, %c2, %c0_64], %84 {strides = array<i32>} : memref<1x5x2xf32, #tpu.memory_space<vmem>>, vector<1x1x2xf32>,
      %c0_65 = arith.constant 0 : index
      %c0_66 = arith.constant 0 : index
      %c0_67 = arith.constant 0 : index
      %85 = vector.load %arg8[%c0_65, %c0_66, %c0_67] : memref<1x8x496xf32, #tpu.memory_space<vmem>>, vector<1x8x496xf32>
      %cst_68 = arith.constant dense<0.000000e+00> : vector<1x496xf32>
      %86 = vector.multi_reduction <add>, %85, %cst_68 [1] : vector<1x8x496xf32> to vector<1x496xf32>
      %cst_69 = arith.constant dense<0.000000e+00> : vector<1x2xf32>
      %87 = tpu.matmul %86, %66, %cst_69 {dimension_numbers = #tpu.dot_dimension_numbers<[1], [0], [0], [1], [0, 0, 1, 1], [], []>} : vector<1x496xf32>, vector<496x2xf32>, vector<1x2xf32> -> vector<1x2xf32>
      %c0_70 = arith.constant 0 : index
      %c3 = arith.constant 3 : index
      %c0_71 = arith.constant 0 : index
      %88 = vector.load %arg4[%c0_70, %c3, %c0_71] : memref<1x5x2xf32, #tpu.memory_space<vmem>>, vector<1x1x2xf32>
      %89 = vector.shape_cast %88 : vector<1x1x2xf32> to vector<1x2xf32>
      %90 = vector.shape_cast %87 : vector<1x2xf32> to vector<1x1x2xf32>
      tpu.vector_store %arg4[%c0_70, %c3, %c0_71], %90 {strides = array<i32>} : memref<1x5x2xf32, #tpu.memory_space<vmem>>, vector<1x1x2xf32>,
      %c0_72 = arith.constant 0 : index
      %c0_73 = arith.constant 0 : index
      %c0_74 = arith.constant 0 : index
      %91 = vector.load %arg9[%c0_72, %c0_73, %c0_74] : memref<1x8x496xf32, #tpu.memory_space<vmem>>, vector<1x8x496xf32>
      %cst_75 = arith.constant dense<0.000000e+00> : vector<1x496xf32>
      %92 = vector.multi_reduction <add>, %91, %cst_75 [1] : vector<1x8x496xf32> to vector<1x496xf32>
      %cst_76 = arith.constant dense<0.000000e+00> : vector<1x2xf32>
      %93 = tpu.matmul %92, %66, %cst_76 {dimension_numbers = #tpu.dot_dimension_numbers<[1], [0], [0], [1], [0, 0, 1, 1], [], []>} : vector<1x496xf32>, vector<496x2xf32>, vector<1x2xf32> -> vector<1x2xf32>
      %c0_77 = arith.constant 0 : index
      %c4 = arith.constant 4 : index
      %c0_78 = arith.constant 0 : index
      %94 = vector.load %arg4[%c0_77, %c4, %c0_78] : memref<1x5x2xf32, #tpu.memory_space<vmem>>, vector<1x1x2xf32>
      %95 = vector.shape_cast %94 : vector<1x1x2xf32> to vector<1x2xf32>
      %96 = vector.shape_cast %93 : vector<1x2xf32> to vector<1x1x2xf32>
      tpu.vector_store %arg4[%c0_77, %c4, %c0_78], %96 {strides = array<i32>} : memref<1x5x2xf32, #tpu.memory_space<vmem>>, vector<1x1x2xf32>,
    } else {
    }
    return
  }
  func.func @transform_0(%arg0: i32, %arg1: i32) -> (i32, i32, i32) {
    %c0_i32 = arith.constant 0 : i32
    %c0_i32_0 = arith.constant 0 : i32
    return %arg0, %arg1, %c0_i32 : i32, i32, i32
  }
  func.func @transform_1(%arg0: i32, %arg1: i32) -> (i32, i32, i32) {
    %c0_i32 = arith.constant 0 : i32
    %c0_i32_0 = arith.constant 0 : i32
    return %arg0, %arg1, %c0_i32 : i32, i32, i32
  }
  func.func @transform_2(%arg0: i32, %arg1: i32) -> (i32, i32, i32) {
    %c0_i32 = arith.constant 0 : i32
    %c0_i32_0 = arith.constant 0 : i32
    %c0_i32_1 = arith.constant 0 : i32
    return %arg0, %c0_i32, %c0_i32_0 : i32, i32, i32
  }
}

</mosaic_0001>

<bundles_post_ra>
// kernel: ccc_loss.1
= control target key start
LH: loop header
LB: loop body
LE: loop exit
PB: predicated region body
PF: predicated region fallthrough
CT: control target
= control target key end

     0   :  { %s3321_s9 = smov 0   ;;  %s3323_s10 = smov 0   ;;  %s4324_s0 = inlined_call_operand.vmem [shape: f32[1,25,496], index: 0, kind: input, shape index: {}]   ;;  %s4325_s1 = inlined_call_operand.vmem [shape: f32[1,25,496], index: 1, kind: input, shape index: {}]   ;;  %s4326_s2 = inlined_call_operand.vmem [shape: f32[1,5,2], index: 2, kind: output, shape index: {}]  }
   0x1   :  { %s3325_s11 = smov 0  }
   0x2 LB: > { %s21_s12 = sadd.s32 1, %s3297_s10  ;;  %p2302_p0 = scmp.ge.s32.totalorder %s3301_s11, 1  ;;  %s3301_s11 = sphi %s3325_s11, %s12_s11   ;;  %s3297_s10 = sphi %s3323_s10, %s4535_s10   ;;  %s3293_s9 = sphi %s3321_s9, %s4534_s9  }
   0x3   : > { %p22_p1 = scmp.ge.s32.totalorder %s21_s12, 4  ;;  %p146_p2 = scmp.lt.s32.totalorder %s3301_s11, 5 }
   0x5   : > { %s4537_s12 = smov (%p22_p1, %s21_s12), 0  ;;  %p147_p3 = pnand %p2302_p0, %p146_p2 }
   0x6   : > { %p182_p4 = scmp.lt.s32.totalorder (!%p147_p3), %s3293_s9, 3  ;;  %p2307_p5 = scmp.ne.s32.totalorder (!%p147_p3), %s3293_s9, 0 }
   0x7   : > { %150 = sbr.rel (%p147_p3) target bundleno = 513 (0x201), region = 28 }
   0xe   : > { %s183_s13 = scalar_select %p182_p4, %s3293_s9, 3 }
   0xf   : > { %205 = sbr.rel (%p2307_p5) target bundleno = 26 (0x1a), region = 32  ;;  %vm209_vm0 = vcmask (!%p2307_p5), 916480   ;;  %v3303_v0 = vmov (!%p2307_p5), 0.0  }
  0x10   : > { %s2690_s14 = sshll.u32 %s183_s13, 5  ;;  %206 = vst [vmem:[#allocation2] sm:$0xff] (!%p2307_p5), %v3303_v0  ;;  %207 = vst [vmem:[#allocation2 + $0x8] sm:$0xff] (!%p2307_p5), %v3303_v0 }
  0x11   : > { %s3346_s17 = scalar_lea.vmem %s4324_s0, %s2690_s14  ;;  %s3351_s20 = scalar_lea.vmem %s4325_s1, %s2690_s14  ;;  %208 = vst [vmem:[#allocation2 + $0x10] sm:$0xff] (!%p2307_p5), %v3303_v0  ;;  %211 = vst [vmem:[#allocation3] sm:$0xff] (!%p2307_p5), %v3303_v0 }
  0x12   : > { %212 = vst [vmem:[#allocation3 + $0x8] sm:$0xff] (!%p2307_p5), %v3303_v0  ;;  %213 = vst [vmem:[#allocation3 + $0x10] sm:$0xff] (!%p2307_p5), %v3303_v0 }
  0x13   : > { %215 = vst [vmem:[#allocation4] sm:$0xff] (!%p2307_p5), %v3303_v0  ;;  %216 = vst [vmem:[#allocation4 + $0x8] sm:$0xff] (!%p2307_p5), %v3303_v0 }
  0x14   : > { %217 = vst [vmem:[#allocation4 + $0x10] sm:$0xff] (!%p2307_p5), %v3303_v0  ;;  %219 = vst [vmem:[#allocation5] sm:$0xff] (!%p2307_p5), %v3303_v0 }
  0x15   : > { %220 = vst [vmem:[#allocation5 + $0x8] sm:$0xff] (!%p2307_p5), %v3303_v0  ;;  %221 = vst [vmem:[#allocation5 + $0x10] sm:$0xff] (!%p2307_p5), %v3303_v0 }
  0x16   : > { %223 = vst [vmem:[#allocation6] sm:$0xff] %v3303_v0  ;;  %224 = vst [vmem:[#allocation6 + $0x8] sm:$0xff] %v3303_v0 }
  0x17   : > { %225 = vst [vmem:[#allocation6 + $0x10] sm:$0xff] %v3303_v0  ;;  %210 = vst.msk [vmem:[#allocation2 + $0x18] sm:$0xff] %vm209_vm0, %v3303_v0 }
  0x18   : > { %214 = vst.msk [vmem:[#allocation3 + $0x18] sm:$0xff] %vm209_vm0, %v3303_v0  ;;  %218 = vst.msk [vmem:[#allocation4 + $0x18] sm:$0xff] %vm209_vm0, %v3303_v0 }
  0x19   : > { %222 = vst.msk [vmem:[#allocation5 + $0x18] sm:$0xff] %vm209_vm0, %v3303_v0  ;;  %226 = vst.msk [vmem:[#allocation6 + $0x18] sm:$0xff] %vm209_vm0, %v3303_v0 }
  0x1a PF: > { %s2308_s21 = sshll.u32 %s3293_s9, 3  ;;  %v228_v1 = vlaneseq  ;;  %v233_v4 = vld [vmem:[%s3346_s17] sm:$0xff]  ;;  %v234_v6 = vld [vmem:[%s3346_s17 + $0x8] sm:$0xff]  ;;  %v235_v8 = vld [vmem:[%s3346_s17 + $0x10] sm:$0xff]  ;;  %vm4327_vm2 = vcmask 916480   ;;  %p2309_p6 = scmp.ne.s32.totalorder %s3293_s9, 3 }
  0x1b   : > { %v243_v2 = vstv %s2308_s21  ;;  %v286_v5 = vld [vmem:[#allocation2] sm:$0xff]  ;;  %v287_v7 = vld [vmem:[#allocation2 + $0x8] sm:$0xff]  ;;  %v236_v11 = vld [vmem:[%s3346_s17 + $0x18] sm:$0xff] }
  0x1c   : > { %v3361_v3 = vshrl.u32 %v228_v1, 7  ;;  %v288_v10 = vld [vmem:[#allocation2 + $0x10] sm:$0xff]  ;;  %v239_v13 = vld [vmem:[%s3351_s20] sm:$0xff]  ;;  %v240_v15 = vld [vmem:[%s3351_s20 + $0x8] sm:$0xff] }
  0x1d   : > { %v299_v14 = vld [vmem:[#allocation3] sm:$0xff]  ;;  %v300_v16 = vld [vmem:[#allocation3 + $0x8] sm:$0xff]  ;;  %v241_v17 = vld [vmem:[%s3351_s20 + $0x10] sm:$0xff] }
  0x1e   : > { %v244_v9 = vadd.s32 %v243_v2, %v3361_v3  ;;  %v289_v12 = vld [vmem:[#allocation2 + $0x18] sm:$0xff]  ;;  %v301_v23 = vld [vmem:[#allocation3 + $0x10] sm:$0xff]  ;;  %v311_v33 = vld [vmem:[#allocation4] sm:$0xff] }
  0x1f   : > { %v242_v18 = vld [vmem:[%s3351_s20 + $0x18] sm:$0xff]  ;;  %v312_v34 = vld [vmem:[#allocation4 + $0x8] sm:$0xff]  ;;  %v313_v39 = vld [vmem:[#allocation4 + $0x10] sm:$0xff] }
  0x20   : > { %vm245_vm1 = vcmp.lt.s32.totalorder %v244_v9, 25  ;;  %v302_v24 = vld [vmem:[#allocation3 + $0x18] sm:$0xff]  ;;  %v323_v41 = vld [vmem:[#allocation5] sm:$0xff]  ;;  %v324_v46 = vld [vmem:[#allocation5 + $0x8] sm:$0xff] }
  0x21   : > { %v246_v19 = vsel %vm245_vm1, %v233_v4, 0.0  ;;  %v247_v20 = vsel %vm245_vm1, %v234_v6, 0.0  ;;  %v248_v21 = vsel %vm245_vm1, %v235_v8, 0.0  ;;  %v249_v22 = vsel %vm245_vm1, %v236_v11, 0.0  ;;  %v314_v40 = vld [vmem:[#allocation4 + $0x18] sm:$0xff]  ;;  %v325_v47 = vld [vmem:[#allocation5 + $0x10] sm:$0xff] }
  0x22   : > { %v290_v25 = vadd.f32 %v286_v5, %v246_v19  ;;  %v291_v26 = vadd.f32 %v287_v7, %v247_v20  ;;  %v292_v27 = vadd.f32 %v288_v10, %v248_v21  ;;  %v293_v28 = vadd.f32 %v289_v12, %v249_v22  ;;  %v326_v48 = vld [vmem:[#allocation5 + $0x18] sm:$0xff]  ;;  %v335_v57 = vld [vmem:[#allocation6] sm:$0xff]  ;;  %v336_v62 = vld [vmem:[#allocation6 + $0x8] sm:$0xff] }
  0x23   : > { %v250_v29 = vsel %vm245_vm1, %v239_v13, 0.0  ;;  %v251_v30 = vsel %vm245_vm1, %v240_v15, 0.0  ;;  %v252_v31 = vsel %vm245_vm1, %v241_v17, 0.0  ;;  %v253_v32 = vsel %vm245_vm1, %v242_v18, 0.0  ;;  %v337_v63 = vld [vmem:[#allocation6 + $0x10] sm:$0xff]  ;;  %v338_v0 = vld [vmem:[#allocation6 + $0x18] sm:$0xff] }
  0x24   : > { %294 = vst [vmem:[#allocation2] sm:$0xff] %v290_v25  ;;  %295 = vst [vmem:[#allocation2 + $0x8] sm:$0xff] %v291_v26  ;;  %v303_v35 = vadd.f32 %v299_v14, %v250_v29  ;;  %v304_v36 = vadd.f32 %v300_v16, %v251_v30  ;;  %v305_v37 = vadd.f32 %v301_v23, %v252_v31  ;;  %v366_v11 = vadd.s32 (!%p2309_p6), 128, %v3361_v3 }
  0x25   : > { %296 = vst [vmem:[#allocation2 + $0x10] sm:$0xff] %v292_v27  ;;  %298 = vst.msk [vmem:[#allocation2 + $0x18] sm:$0xff] %vm4327_vm2, %v293_v28  ;;  %v306_v38 = vadd.f32 %v302_v24, %v253_v32  ;;  %v262_v42 = vmul.f32 %v246_v19, %v246_v19  ;;  %v263_v43 = vmul.f32 %v247_v20, %v247_v20  ;;  %v367_v12 = vadd.s32 (!%p2309_p6), 136, %v3361_v3 }
  0x26   : > { %v264_v44 = vmul.f32 %v248_v21, %v248_v21  ;;  %v265_v45 = vmul.f32 %v249_v22, %v249_v22  ;;  %307 = vst [vmem:[#allocation3] sm:$0xff] %v303_v35  ;;  %308 = vst [vmem:[#allocation3 + $0x8] sm:$0xff] %v304_v36  ;;  %v270_v49 = vmul.f32 %v250_v29, %v250_v29  ;;  %v3389_v13 = vand.u32 (!%p2309_p6), 127, %v228_v1 }
  0x27   : > { %309 = vst [vmem:[#allocation3 + $0x10] sm:$0xff] %v305_v37  ;;  %310 = vst.msk [vmem:[#allocation3 + $0x18] sm:$0xff] %vm4327_vm2, %v306_v38  ;;  %v271_v50 = vmul.f32 %v251_v30, %v251_v30  ;;  %v272_v51 = vmul.f32 %v252_v31, %v252_v31  ;;  %v273_v52 = vmul.f32 %v253_v32, %v253_v32  ;;  %v351_v14 = vadd.s32 (!%p2309_p6), 8, %v3361_v3 }
  0x28   : > { %v315_v53 = vadd.f32 %v311_v33, %v262_v42  ;;  %v316_v54 = vadd.f32 %v312_v34, %v263_v43  ;;  %v317_v55 = vadd.f32 %v313_v39, %v264_v44  ;;  %v318_v56 = vadd.f32 %v314_v40, %v265_v45 }
  0x29   : > { %v327_v58 = vadd.f32 %v323_v41, %v270_v49  ;;  %v328_v59 = vadd.f32 %v324_v46, %v271_v50  ;;  %v329_v60 = vadd.f32 %v325_v47, %v272_v51  ;;  %v330_v61 = vadd.f32 %v326_v48, %v273_v52  ;;  %350 = sbr.rel (%p2309_p6) target bundleno = 513 (0x201), region = 36 }
  0x2a   : > { %319 = vst [vmem:[#allocation4] sm:$0xff] %v315_v53  ;;  %320 = vst [vmem:[#allocation4 + $0x8] sm:$0xff] %v316_v54  ;;  %v278_v2 = vmul.f32 %v250_v29, %v246_v19  ;;  %v279_v4 = vmul.f32 %v251_v30, %v247_v20  ;;  %v280_v5 = vmul.f32 %v252_v31, %v248_v21  ;;  %v416_v15 = vand.u32 (!%p2309_p6), 1, %v3361_v3 }
  0x2b   : > { %321 = vst [vmem:[#allocation4 + $0x10] sm:$0xff] %v317_v55  ;;  %322 = vst.msk [vmem:[#allocation4 + $0x18] sm:$0xff] %vm4327_vm2, %v318_v56  ;;  %v281_v6 = vmul.f32 %v253_v32, %v249_v22  ;;  %v368_v16 = vadd.s32 (!%p2309_p6), 144, %v3361_v3  ;;  %v369_v17 = vadd.s32 (!%p2309_p6), 152, %v3361_v3  ;;  %v528_v18 = vand.u32 (!%p2309_p6), 1, %v366_v11 }
  0x2c   : > { %331 = vst [vmem:[#allocation5] sm:$0xff] %v327_v58  ;;  %332 = vst [vmem:[#allocation5 + $0x8] sm:$0xff] %v328_v59  ;;  %v339_v7 = vadd.f32 %v335_v57, %v278_v2  ;;  %v340_v8 = vadd.f32 %v336_v62, %v279_v4  ;;  %v341_v9 = vadd.f32 %v337_v63, %v280_v5  ;;  %v535_v19 = vand.u32 (!%p2309_p6), 1, %v367_v12 }
  0x2d   : > { %333 = vst [vmem:[#allocation5 + $0x10] sm:$0xff] %v329_v60  ;;  %334 = vst.msk [vmem:[#allocation5 + $0x18] sm:$0xff] %vm4327_vm2, %v330_v61  ;;  %v342_v10 = vadd.f32 %v338_v0, %v281_v6  ;;  %v352_v20 = vadd.s32 (!%p2309_p6), 16, %v3361_v3  ;;  %v353_v21 = vadd.s32 (!%p2309_p6), 24, %v3361_v3  ;;  %v423_v22 = vand.u32 (!%p2309_p6), 1, %v351_v14 }
  0x2e   : > { %343 = vst [vmem:[#allocation6] sm:$0xff] %v339_v7  ;;  %344 = vst [vmem:[#allocation6 + $0x8] sm:$0xff] %v340_v8  ;;  %vm3398_vm3 = vcmp.eq.s32.totalorder (!%p2309_p6), %v416_v15, %v3389_v13  ;;  %v542_v1 = vand.u32 (!%p2309_p6), 1, %v368_v16  ;;  %v549_v24 = vand.u32 (!%p2309_p6), 1, %v369_v17  ;;  %vm1174_vm4 = vcmp.eq.s32.totalorder (!%p2309_p6), %v528_v18, %v3389_v13 }
  0x2f   : > { %345 = vst [vmem:[#allocation6 + $0x10] sm:$0xff] %v341_v9  ;;  %346 = vst.msk [vmem:[#allocation6 + $0x18] sm:$0xff] %vm4327_vm2, %v342_v10  ;;  %vm1175_vm5 = vcmp.eq.s32.totalorder (!%p2309_p6), %v535_v19, %v3389_v13  ;;  %v430_v25 = vand.u32 (!%p2309_p6), 1, %v352_v20  ;;  %v437_v26 = vand.u32 (!%p2309_p6), 1, %v353_v21  ;;  %v4390_v27 = vmov (!%p2309_p6), 0 }
  0x30   : > { %vm3404_vm6 = vmpackc.low %vm1175_vm5, %vm1174_vm4  ;;  %vm1159_vm7 = vcmp.eq.s32.totalorder %v423_v22, %v3389_v13  ;;  %vm1176_vm8 = vcmp.eq.s32.totalorder %v542_v1, %v3389_v13  ;;  %vm1177_vm9 = vcmp.eq.s32.totalorder %v549_v24, %v3389_v13  ;;  %v370_v28 = vadd.s32 160, %v3361_v3 }
  0x31   : > { %v4391_v27 = vsel %vm3404_vm6, 4294967295, %v4390_v27  ;;  %v3304_v29 = vmov 1.0|1.0   ;;  %vm3420_vm10 = vmpackc.low %vm1159_vm7, %vm3398_vm3  ;;  %v4392_v30 = vmov 0  ;;  %vm1160_vm11 = vcmp.eq.s32.totalorder %v430_v25, %v3389_v13  ;;  %v1345_v25 = vld [vmem:[#allocation2 + $0x8] sm:$0xff] }
  0x32   : > { %2868 = vmatprep.subr.msk.bf16.mxu1 %vm3404_vm6, %v3304_v29  ;;  %2945 = vmatprep.subr.msk.bf16.mxu0 %vm3404_vm6, %v3304_v29  ;;  %v4393_v30 = vsel %vm3420_vm10, 4294967295, %v4392_v30  ;;  %vm1161_vm12 = vcmp.eq.s32.totalorder %v437_v26, %v3389_v13  ;;  %v371_v31 = vadd.s32 168, %v3361_v3  ;;  %v354_v32 = vadd.s32 32, %v3361_v3  ;;  %vm3434_vm13 = vmpackc.low %vm1177_vm9, %vm1176_vm8 }
  0x33   : > { %2870 = vmatpush3.bf16.msk.msra.mxu1 %vm3420_vm10, %v3304_v29  ;;  %2947 = vmatpush3.bf16.msk.msra.mxu0 %vm3420_vm10, %v3304_v29  ;;  %v4394_v33 = vmov 0  ;;  %v556_v34 = vand.u32 1, %v370_v28  ;;  %v355_v35 = vadd.s32 40, %v3361_v3  ;;  %v372_v36 = vadd.s32 176, %v3361_v3  ;;  %vm3447_vm14 = vmpackc.low %vm1161_vm12, %vm1160_vm11 }
  0x34   : > { %v4395_v33 = vsel %vm3434_vm13, 4294967295, %v4394_v33  ;;  %v373_v37 = vadd.s32 184, %v3361_v3  ;;  %2872 = vmatprep.subr.msk.bf16.mxu1 %vm3434_vm13, %v3304_v29  ;;  %2949 = vmatprep.subr.msk.bf16.mxu0 %vm3434_vm13, %v3304_v29  ;;  %v4396_v38 = vmov 0  ;;  %v563_v39 = vand.u32 1, %v371_v31 }
  0x35   : > { %v4397_v38 = vsel %vm3447_vm14, 4294967295, %v4396_v38  ;;  %v444_v40 = vand.u32 1, %v354_v32  ;;  %v356_v41 = vadd.s32 48, %v3361_v3  ;;  %v357_v42 = vadd.s32 56, %v3361_v3 }
  0x36   : > { %vm1178_vm15 = vcmp.eq.s32.totalorder %v556_v34, %v3389_v13  ;;  %v451_v43 = vand.u32 1, %v355_v35  ;;  %v570_v44 = vand.u32 1, %v372_v36  ;;  %v577_v45 = vand.u32 1, %v373_v37  ;;  %v1344_v34 = vld [vmem:[#allocation2] sm:$0xff] }
  0x37   : > { %vm1179_vm0 = vcmp.eq.s32.totalorder %v563_v39, %v3389_v13  ;;  %vm1162_vm1 = vcmp.eq.s32.totalorder %v444_v40, %v3389_v13  ;;  %v458_v46 = vand.u32 1, %v356_v41  ;;  %v465_v47 = vand.u32 1, %v357_v42  ;;  %2874 = vmatpush3.bf16.msk.msra.mxu1 %vm3447_vm14, %v3304_v29  ;;  %2951 = vmatpush3.bf16.msk.msra.mxu0 %vm3447_vm14, %v3304_v29  ;;  %v1519_v40 = vld [vmem:[#allocation3 + $0x8] sm:$0xff] }
  0x38   : > { %vm3462_vm3 = vmpackc.low %vm1179_vm0, %vm1178_vm15  ;;  %v4398_v48 = vmov 0  ;;  %vm1163_vm4 = vcmp.eq.s32.totalorder %v451_v43, %v3389_v13  ;;  %vm1180_vm5 = vcmp.eq.s32.totalorder %v570_v44, %v3389_v13  ;;  %vm1181_vm7 = vcmp.eq.s32.totalorder %v577_v45, %v3389_v13  ;;  %v1518_v43 = vld [vmem:[#allocation3] sm:$0xff]  ;;  %v1692_v45 = vld [vmem:[#allocation4 + $0x8] sm:$0xff] }
  0x39   : > { %v4399_v48 = vsel %vm3462_vm3, 4294967295, %v4398_v48  ;;  %v374_v49 = vadd.s32 192, %v3361_v3  ;;  %2876 = vmatprep.subr.msk.bf16.mxu1 %vm3462_vm3, %v3304_v29  ;;  %2953 = vmatprep.subr.msk.bf16.mxu0 %vm3462_vm3, %v3304_v29  ;;  %vm3476_vm8 = vmpackc.low %vm1163_vm4, %vm1162_vm1  ;;  %v4400_v50 = vmov 0  ;;  %vm3481_vm9 = vcmp.eq.s32.totalorder %v458_v46, %v3389_v13 }
  0x3a   : > { %v4401_v50 = vsel %vm3476_vm8, 4294967295, %v4400_v50  ;;  %vm3486_vm11 = vcmp.eq.s32.totalorder %v465_v47, %v3389_v13  ;;  %v375_v53 = vadd.s32 200, %v3361_v3  ;;  %v358_v54 = vadd.s32 64, %v3361_v3  ;;  %vm3492_vm12 = vmpackc.low %vm1181_vm7, %vm1180_vm5 }
  0x3b   : > { %v4406_v55 = vmov 0  ;;  %v584_v56 = vand.u32 1, %v374_v49  ;;  %v359_v57 = vadd.s32 72, %v3361_v3  ;;  %v376_v58 = vadd.s32 208, %v3361_v3  ;;  %2878 = vmatpush3.bf16.msk.msra.mxu1 %vm3476_vm8, %v3304_v29  ;;  %2955 = vmatpush3.bf16.msk.msra.mxu0 %vm3476_vm8, %v3304_v29  ;;  %vm3518_vm0 = vmpackc.low %vm3486_vm11, %vm3481_vm9 }
  0x3c   : > { %v4407_v55 = vsel %vm3492_vm12, 4294967295, %v4406_v55  ;;  %v377_v59 = vadd.s32 216, %v3361_v3  ;;  %v591_v60 = vand.u32 1, %v375_v53  ;;  %v472_v61 = vand.u32 1, %v358_v54  ;;  %2880 = vmatprep.subr.msk.bf16.mxu1 %vm3492_vm12, %v3304_v29  ;;  %2957 = vmatprep.subr.msk.bf16.mxu0 %vm3492_vm12, %v3304_v29 }
  0x3d   : > { %v360_v62 = vadd.s32 80, %v3361_v3  ;;  %v361_v63 = vadd.s32 88, %v3361_v3  ;;  %vm1182_vm15 = vcmp.eq.s32.totalorder %v584_v56, %v3389_v13  ;;  %v479_v0 = vand.u32 1, %v359_v57  ;;  %v1691_v57 = vld [vmem:[#allocation4] sm:$0xff] }
  0x3e   : > { %v598_v2 = vand.u32 1, %v376_v58  ;;  %v605_v4 = vand.u32 1, %v377_v59  ;;  %v4408_v5 = vmov 0  ;;  %vm1183_vm1 = vcmp.eq.s32.totalorder %v591_v60, %v3389_v13 }
  0x3f   : > { %v4409_v5 = vsel %vm3518_vm0, 4294967295, %v4408_v5  ;;  %vm3524_vm4 = vcmp.eq.s32.totalorder %v472_v61, %v3389_v13  ;;  %vm3528_vm5 = vmpackc.low %vm1183_vm1, %vm1182_vm15  ;;  %v4412_v7 = vmov 0  ;;  %vm3533_vm7 = vcmp.eq.s32.totalorder %v479_v0, %v3389_v13  ;;  %2882 = vmatpush3.bf16.msk.msra.mxu1 %vm3518_vm0, %v3304_v29  ;;  %2959 = vmatpush3.bf16.msk.msra.mxu0 %vm3518_vm0, %v3304_v29 }
  0x40   : > { %v4413_v7 = vsel %vm3528_vm5, 4294967295, %v4412_v7  ;;  %v486_v9 = vand.u32 1, %v360_v62  ;;  %v493_v10 = vand.u32 1, %v361_v63  ;;  %v378_v11 = vadd.s32 224, %v3361_v3  ;;  %2884 = vmatprep.subr.msk.bf16.mxu1 %vm3528_vm5, %v3304_v29  ;;  %2961 = vmatprep.subr.msk.bf16.mxu0 %vm3528_vm5, %v3304_v29  ;;  %vm3569_vm15 = vmpackc.low %vm3533_vm7, %vm3524_vm4 }
  0x41   : > { %vm3539_vm9 = vcmp.eq.s32.totalorder %v598_v2, %v3389_v13  ;;  %vm3544_vm11 = vcmp.eq.s32.totalorder %v605_v4, %v3389_v13  ;;  %v379_v15 = vadd.s32 232, %v3361_v3  ;;  %v362_v16 = vadd.s32 96, %v3361_v3 }
  0x42   : > { %v612_v17 = vand.u32 1, %v378_v11  ;;  %v363_v18 = vadd.s32 104, %v3361_v3  ;;  %v380_v19 = vadd.s32 240, %v3361_v3  ;;  %v381_v20 = vadd.s32 248, %v3361_v3  ;;  %vm3579_vm1 = vmpackc.low %vm3544_vm11, %vm3539_vm9 }
  0x43   : > { %v4420_v21 = vmov 0  ;;  %v619_v22 = vand.u32 1, %v379_v15  ;;  %v500_v23 = vand.u32 1, %v362_v16  ;;  %v364_v1 = vadd.s32 112, %v3361_v3  ;;  %2886 = vmatpush3.bf16.msk.msra.mxu1 %vm3569_vm15, %v3304_v29  ;;  %2963 = vmatpush3.bf16.msk.msra.mxu0 %vm3569_vm15, %v3304_v29 }
  0x44   : > { %v4421_v21 = vsel %vm3569_vm15, 4294967295, %v4420_v21  ;;  %v365_v24 = vadd.s32 120, %v3361_v3  ;;  %v4422_v26 = vmov 0  ;;  %vm3584_vm4 = vcmp.eq.s32.totalorder %v486_v9, %v3389_v13  ;;  %2888 = vmatprep.subr.msk.bf16.mxu1 %vm3579_vm1, %v3304_v29  ;;  %2965 = vmatprep.subr.msk.bf16.mxu0 %vm3579_vm1, %v3304_v29 }
  0x45   : > { %v4423_v26 = vsel %vm3579_vm1, 4294967295, %v4422_v26  ;;  %vm3589_vm7 = vcmp.eq.s32.totalorder %v493_v10, %v3389_v13  ;;  %v507_v32 = vand.u32 1, %v363_v18  ;;  %vm3594_vm2 = vcmp.eq.s32.totalorder %v612_v17, %v3389_v13 }
  0x46   : > { %vm3599_vm9 = vcmp.eq.s32.totalorder %v619_v22, %v3389_v13  ;;  %v626_v37 = vand.u32 1, %v380_v19  ;;  %v633_v39 = vand.u32 1, %v381_v20  ;;  %vm3610_vm11 = vcmp.eq.s32.totalorder %v500_v23, %v3389_v13  ;;  %vm3624_vm15 = vmpackc.low %vm3589_vm7, %vm3584_vm4  ;;  %v1694_v23 = vld [vmem:[#allocation4 + $0x18] sm:$0xff] }
  0x47   : > { %v1354_v42 = vrot.slane %v1345_v25, 4  ;;  %v4434_v44 = vmov 0  ;;  %vm3629_vm5 = vcmp.eq.s32.totalorder %v507_v32, %v3389_v13  ;;  %v514_v46 = vand.u32 1, %v364_v1  ;;  %vm3637_vm1 = vmpackc.low %vm3599_vm9, %vm3594_vm2  ;;  %2890 = vmatpush3.bf16.msk.msra.mxu1 %vm3624_vm15, %v3304_v29  ;;  %2967 = vmatpush3.bf16.msk.msra.mxu0 %vm3624_vm15, %v3304_v29 }
  0x48   : > { %v4435_v44 = vsel %vm3624_vm15, 4294967295, %v4434_v44  ;;  %v521_v47 = vand.u32 1, %v365_v24  ;;  %v1348_v49 = vrot.slane %v1344_v34, 4  ;;  %v4438_v51 = vmov 0  ;;  %2892 = vmatprep.subr.msk.bf16.mxu1 %vm3637_vm1, %v3304_v29  ;;  %2969 = vmatprep.subr.msk.bf16.mxu0 %vm3637_vm1, %v3304_v29  ;;  %vm3671_vm2 = vmpackc.low %vm3629_vm5, %vm3610_vm11 }
  0x49   : > { %v4439_v51 = vsel %vm3637_vm1, 4294967295, %v4438_v51  ;;  %v1355_v52 = vadd.f32 %v1354_v42, %v1345_v25  ;;  %v1528_v53 = vrot.slane %v1519_v40, 4  ;;  %v382_v54 = vadd.s32 256, %v3361_v3 }
  0x4a   : > { %v383_v56 = vadd.s32 264, %v3361_v3  ;;  %vm3644_vm4 = vcmp.eq.s32.totalorder %v626_v37, %v3389_v13  ;;  %vm3649_vm7 = vcmp.eq.s32.totalorder %v633_v39, %v3389_v13  ;;  %v1349_v59 = vadd.f32 %v1348_v49, %v1344_v34 }
  0x4b   : > { %v1522_v60 = vrot.slane %v1518_v43, 4  ;;  %v1356_v61 = vrot.slane %v1355_v52, 2  ;;  %v1529_v62 = vadd.f32 %v1528_v53, %v1519_v40  ;;  %v384_v63 = vadd.s32 272, %v3361_v3  ;;  %vm3679_vm9 = vmpackc.low %vm3649_vm7, %vm3644_vm4  ;;  %2894 = vmatpush3.bf16.msk.msra.mxu1 %vm3671_vm2, %v3304_v29  ;;  %2971 = vmatpush3.bf16.msk.msra.mxu0 %vm3671_vm2, %v3304_v29 }
  0x4c   : > { %v385_v0 = vadd.s32 280, %v3361_v3  ;;  %v4444_v2 = vmov 0  ;;  %v1350_v4 = vrot.slane %v1349_v59, 2  ;;  %v640_v6 = vand.u32 1, %v382_v54  ;;  %2896 = vmatprep.subr.msk.bf16.mxu1 %vm3679_vm9, %v3304_v29  ;;  %2973 = vmatprep.subr.msk.bf16.mxu0 %vm3679_vm9, %v3304_v29 }
  0x4d   : > { %v4445_v2 = vsel %vm3671_vm2, 4294967295, %v4444_v2  ;;  %v647_v8 = vand.u32 1, %v383_v56  ;;  %v1523_v9 = vadd.f32 %v1522_v60, %v1518_v43  ;;  %v4446_v10 = vmov 0 }
  0x4e   : > { %v4447_v10 = vsel %vm3679_vm9, 4294967295, %v4446_v10  ;;  %vm1172_vm1 = vcmp.eq.s32.totalorder %v514_v46, %v3389_v13  ;;  %vm1173_vm15 = vcmp.eq.s32.totalorder %v521_v47, %v3389_v13  ;;  %v1357_v11 = vadd.f32 %v1356_v61, %v1355_v52 }
  0x4f   : > { %v1530_v12 = vrot.slane %v1529_v62, 2  ;;  %v1351_v14 = vadd.f32 %v1350_v4, %v1349_v59  ;;  %v1524_v15 = vrot.slane %v1523_v9, 2  ;;  %v654_v18 = vand.u32 1, %v384_v63  ;;  %vm3697_vm5 = vmpackc.low %vm1173_vm15, %vm1172_vm1 }
  0x50   : > { %v1358_v16 = vrot.slane %v1357_v11, 1  ;;  %v661_v19 = vand.u32 1, %v385_v0  ;;  %v4448_v20 = vmov 0  ;;  %vm3702_vm11 = vcmp.eq.s32.totalorder %v640_v6, %v3389_v13  ;;  %2898 = vmatpush3.bf16.msk.msra.mxu1 %vm3697_vm5, %v3304_v29  ;;  %2975 = vmatpush3.bf16.msk.msra.mxu0 %vm3697_vm5, %v3304_v29 }
  0x51   : > { %v1531_v17 = vadd.f32 %v1530_v12, %v1529_v62  ;;  %v4449_v20 = vsel %vm3697_vm5, 4294967295, %v4448_v20  ;;  %v1352_v22 = vrot.slane %v1351_v14, 1  ;;  %vm1191_vm4 = vcmp.eq.s32.totalorder %v647_v8, %v3389_v13  ;;  %3022 = vmatprep.subr.msk.bf16.mxu0 %vm3404_vm6, %v3304_v29 }
  0x52   : > { %v1525_v1 = vadd.f32 %v1524_v15, %v1523_v9  ;;  %v1359_v24 = vadd.f32 %v1358_v16, %v1357_v11  ;;  %v386_v28 = vadd.s32 288, %v3361_v3  ;;  %v387_v31 = vadd.s32 296, %v3361_v3  ;;  %vm3718_vm15 = vmpackc.low %vm1191_vm4, %vm3702_vm11 }
  0x53   : > { %v1532_v25 = vrot.slane %v1531_v17, 1  ;;  %v1353_v32 = vadd.f32 %v1352_v22, %v1351_v14  ;;  %v3305_v36 = vmov 0.0|0.0   ;;  %v388_v40 = vadd.s32 304, %v3361_v3  ;;  %v1347_v22 = vld [vmem:[#allocation2 + $0x18] sm:$0xff] }
  0x54   : > { %v1526_v34 = vrot.slane %v1525_v1, 1  ;;  %1440 = vmatprep.mubr.f32.mxu1 %v1359_v24  ;;  %2899 = vmatprep.subr.bf16.mxu1 %v3305_v36  ;;  %v389_v41 = vadd.s32 312, %v3361_v3  ;;  %vm1192_vm1 = vcmp.eq.s32.totalorder %v654_v18, %v3389_v13  ;;  %vm1193_vm7 = vcmp.eq.s32.totalorder %v661_v19, %v3389_v13 }
  0x55   : > { %v1533_v35 = vadd.f32 %v1532_v25, %v1531_v17  ;;  %v668_v42 = vand.u32 1, %v386_v28  ;;  %v675_v43 = vand.u32 1, %v387_v31  ;;  %1441 = vmatmul.mubr.f32.vlgmr.msra.gmra.mrb[0].mxu1 %v1353_v32  ;;  %vm3739_vm11 = vmpackc.low %vm1193_vm7, %vm1192_vm1  ;;  %v682_v47 = vand.u32 1, %v388_v40 }
  0x56   : > { %v1527_v39 = vadd.f32 %v1526_v34, %v1525_v1  ;;  %2901 = vmatpush1.bf16.msk.msra.mxu1 %vm3718_vm15, %v3304_v29  ;;  %v689_v49 = vand.u32 1, %v389_v41  ;;  %v390_v52 = vadd.s32 320, %v3361_v3  ;;  %v391_v53 = vadd.s32 328, %v3361_v3 }
  0x57   : > { %1614 = vmatprep.mubr.f32.mxu0 %v1533_v35  ;;  %2902 = vmatprep.subr.bf16.mxu1 %v3305_v36  ;;  %vm1194_vm4 = vcmp.eq.s32.totalorder %v668_v42, %v3389_v13  ;;  %vm1195_vm6 = vcmp.eq.s32.totalorder %v675_v43, %v3389_v13  ;;  %v1701_v54 = vrot.slane %v1692_v45, 4  ;;  %v4456_v58 = vmov 0 }
  0x58   : > { %1615 = vmatmul.mubr.f32.vlgmr.msra.gmra.mrb[0].mxu0 %v1527_v39  ;;  %vm3757_vm1 = vmpackc.low %vm1195_vm6, %vm1194_vm4  ;;  %vm1196_vm7 = vcmp.eq.s32.totalorder %v682_v47, %v3389_v13  ;;  %v696_v59 = vand.u32 1, %v390_v52  ;;  %v703_v60 = vand.u32 1, %v391_v53  ;;  %v392_v61 = vadd.s32 336, %v3361_v3 }
  0x59   : > { %3024 = vmatpush3.bf16.msk.msra.mxu0 %vm3420_vm10, %v3304_v29  ;;  %v1702_v56 = vadd.f32 %v1701_v54, %v1692_v45  ;;  %v4457_v58 = vsel %vm3757_vm1, 4294967295, %v4456_v58  ;;  %v393_v62 = vadd.s32 344, %v3361_v3  ;;  %v1695_v0 = vrot.slane %v1691_v57, 4 }
  0x5a   : > { %3026 = vmatprep.subr.msk.bf16.mxu0 %vm3434_vm13, %v3304_v29  ;;  %2904 = vmatpush1.bf16.msk.msra.mxu1 %vm3739_vm11, %v3304_v29  ;;  %vm1197_vm13 = vcmp.eq.s32.totalorder %v689_v49, %v3389_v13  ;;  %v4458_v6 = vmov 0  ;;  %vm1198_vm4 = vcmp.eq.s32.totalorder %v696_v59, %v3389_v13  ;;  %v394_v8 = vadd.s32 352, %v3361_v3 }
  0x5b   : > { %2905 = vmatprep.subr.bf16.mxu1 %v3305_v36  ;;  %v1703_v63 = vrot.slane %v1702_v56, 2  ;;  %vm3775_vm6 = vmpackc.low %vm1197_vm13, %vm1196_vm7  ;;  %v395_v9 = vadd.s32 360, %v3361_v3  ;;  %v710_v11 = vand.u32 1, %v392_v61  ;;  %v717_v12 = vand.u32 1, %v393_v62 }
  0x5c   : > { %v4459_v6 = vsel %vm3775_vm6, 4294967295, %v4458_v6  ;;  %v1696_v15 = vadd.f32 %v1695_v0, %v1691_v57  ;;  %vm4460_vm13 = vnez %v4413_v7  ;;  %v4461_v17 = vmov 0 }
  0x5d   : > { %3028 = vmatpush3.bf16.msk.msra.mxu0 %vm3447_vm14, %v3304_v29  ;;  %v1704_v4 = vadd.f32 %v1703_v63, %v1702_v56  ;;  %v396_v18 = vadd.s32 368, %v3361_v3  ;;  %v397_v19 = vadd.s32 376, %v3361_v3  ;;  %v724_v1 = vand.u32 1, %v394_v8 }
  0x5e   : > { %3030 = vmatprep.subr.msk.bf16.mxu0 %vm3462_vm3, %v3304_v29  ;;  %2907 = vmatpush1.bf16.msk.msra.mxu1 %vm3757_vm1, %v3304_v29  ;;  %vm1199_vm3 = vcmp.eq.s32.totalorder %v703_v60, %v3389_v13  ;;  %v731_v24 = vand.u32 1, %v395_v9  ;;  %v1697_v25 = vrot.slane %v1696_v15, 2  ;;  %v4467_v32 = vmov 0 }
  0x5f   : > { %2908 = vmatprep.subr.bf16.mxu1 %v3305_v36  ;;  %v1705_v14 = vrot.slane %v1704_v4, 1  ;;  %vm3793_vm7 = vmpackc.low %vm1199_vm3, %vm1198_vm4  ;;  %vm4463_vm3 = vnez %v4421_v21  ;;  %vm4464_vm4 = vcmask 916480   ;;  %v738_v34 = vand.u32 1, %v396_v18 }
  0x60   : > { %v4462_v17 = vsel %vm3793_vm7, 4294967295, %v4461_v17  ;;  %v1366_v28 = vsel %vm4464_vm4, %v1347_v22, 0.0  ;;  %v745_v35 = vand.u32 1, %v397_v19  ;;  %v398_v41 = vadd.s32 384, %v3361_v3 }
  0x61   : > { %3032 = vmatpush3.bf16.msk.msra.mxu0 %vm3476_vm8, %v3304_v29  ;;  %v1706_v16 = vadd.f32 %v1705_v14, %v1704_v4  ;;  %vm4466_vm8 = vnez %v4423_v26  ;;  %v1367_v39 = vrot.slane %v1366_v28, 4  ;;  %v399_v42 = vadd.s32 392, %v3361_v3 }
  0x62   : > { %3034 = vmatprep.subr.msk.bf16.mxu0 %vm3492_vm12, %v3304_v29  ;;  %2910 = vmatpush1.bf16.msk.msra.mxu1 %vm3775_vm6, %v3304_v29  ;;  %vm1200_vm12 = vcmp.eq.s32.totalorder %v710_v11, %v3389_v13  ;;  %v1698_v43 = vadd.f32 %v1697_v25, %v1696_v15  ;;  %v4471_v49 = vmov 0  ;;  %v400_v53 = vadd.s32 400, %v3361_v3 }
  0x63   : > { %2911 = vmatprep.subr.bf16.mxu1 %v3305_v36  ;;  %1787 = vmatprep.mubr.f32.mxu0 %v1706_v16  ;;  %v1368_v45 = vadd.f32 %v1367_v39, %v1366_v28  ;;  %v752_v57 = vand.u32 1, %v398_v41  ;;  %v759_v59 = vand.u32 1, %v399_v42  ;;  %v401_v60 = vadd.s32 408, %v3361_v3  ;;  %v1346_v28 = vld [vmem:[#allocation2 + $0x10] sm:$0xff] }
  0x64   : > { %v1699_v61 = vrot.slane %v1698_v43, 1  ;;  %v4475_v0 = vmov 0  ;;  %v766_v4 = vand.u32 1, %v400_v53  ;;  %v402_v8 = vadd.s32 416, %v3361_v3 }
  0x65   : > { %3036 = vmatpush3.bf16.msk.msra.mxu0 %vm3518_vm0, %v3304_v29  ;;  %vm1201_vm0 = vcmp.eq.s32.totalorder %v717_v12, %v3389_v13  ;;  %v1369_v54 = vrot.slane %v1368_v45, 2  ;;  %v403_v9 = vadd.s32 424, %v3361_v3  ;;  %v773_v12 = vand.u32 1, %v401_v60 }
  0x66   : > { %3038 = vmatprep.subr.msk.bf16.mxu0 %vm4460_vm13, %v3304_v29  ;;  %2913 = vmatpush1.bf16.msk.msra.mxu1 %vm3793_vm7, %v3304_v29  ;;  %vm4465_vm13 = vmmov %vm4464_vm4  ;;  %vm1203_vm4 = vcmp.eq.s32.totalorder %v731_v24, %v3389_v13  ;;  %v1700_v15 = vadd.f32 %v1699_v61, %v1698_v43  ;;  %v4477_v18 = vmov 0  ;;  %v780_v22 = vand.u32 1, %v402_v8 }
  0x67   : > { %v1713_v31 = vsel %vm4465_vm13, %v1694_v23, 0.0  ;;  %2914 = vmatprep.subr.bf16.mxu1 %v3305_v36  ;;  %vm3813_vm14 = vmpackc.low %vm1201_vm0, %vm1200_vm12  ;;  %vm4469_vm12 = vnez %v4435_v44  ;;  %vm4470_vm0 = vnez %v4439_v51  ;;  %v1370_v62 = vadd.f32 %v1369_v54, %v1368_v45 }
  0x68   : > { %v4468_v32 = vsel %vm3813_vm14, 4294967295, %v4467_v32  ;;  %v1714_v40 = vrot.slane %v1713_v31, 4  ;;  %v787_v23 = vand.u32 1, %v403_v9  ;;  %v405_v24 = vadd.s32 440, %v3361_v3 }
  0x69   : > { %3040 = vmatpush3.bf16.msk.msra.mxu0 %vm4463_vm3, %v3304_v29  ;;  %vm1202_vm3 = vcmp.eq.s32.totalorder %v724_v1, %v3389_v13  ;;  %v1371_v11 = vrot.slane %v1370_v62, 1  ;;  %v404_v1 = vadd.s32 432, %v3361_v3  ;;  %v407_v41 = vadd.s32 456, %v3361_v3 }
  0x6a   : > { %3042 = vmatprep.subr.msk.bf16.mxu0 %vm4466_vm8, %v3304_v29  ;;  %v1715_v47 = vadd.f32 %v1714_v40, %v1713_v31  ;;  %2916 = vmatpush1.bf16.msk.msra.mxu1 %vm3813_vm14, %v3304_v29  ;;  %vm3831_vm13 = vmpackc.low %vm1203_vm4, %vm1202_vm3  ;;  %vm3836_vm8 = vcmp.eq.s32.totalorder %v738_v34, %v3389_v13  ;;  %vm1206_vm4 = vcmp.eq.s32.totalorder %v752_v57, %v3389_v13  ;;  %v1521_v31 = vld [vmem:[#allocation3 + $0x18] sm:$0xff]  ;;  %v4482_v34 = vmov 0 }
  0x6b   : > { %2917 = vmatprep.subr.bf16.mxu1 %v3305_v36  ;;  %v4472_v49 = vsel %vm3831_vm13, 4294967295, %v4471_v49  ;;  %v1372_v16 = vadd.f32 %v1371_v11, %v1370_v62  ;;  %v794_v39 = vand.u32 1, %v404_v1  ;;  %v801_v40 = vand.u32 1, %v405_v24  ;;  %v1693_v24 = vld [vmem:[#allocation4 + $0x10] sm:$0xff] }
  0x6c   : > { %v1716_v56 = vrot.slane %v1715_v47, 2  ;;  %v1360_v42 = vrot.slane %v1346_v28, 4  ;;  %v4486_v45 = vmov 0  ;;  %v408_v52 = vadd.s32 464, %v3361_v3 }
  0x6d   : > { %3044 = vmatpush3.bf16.msk.msra.mxu0 %vm4469_vm12, %v3304_v29  ;;  %vm1205_vm12 = vcmp.eq.s32.totalorder %v745_v35, %v3389_v13  ;;  %v406_v35 = vadd.s32 448, %v3361_v3  ;;  %v409_v53 = vadd.s32 472, %v3361_v3  ;;  %v815_v54 = vand.u32 1, %v407_v41 }
  0x6e   : > { %3046 = vmatprep.subr.msk.bf16.mxu0 %vm4470_vm0, %v3304_v29  ;;  %v1717_v63 = vadd.f32 %v1716_v56, %v1715_v47  ;;  %2919 = vmatpush1.bf16.msk.msra.mxu1 %vm3831_vm13, %v3304_v29  ;;  %vm3855_vm3 = vmpackc.low %vm1205_vm12, %vm3836_vm8  ;;  %vm3876_vm12 = vcmp.eq.s32.totalorder %v766_v4, %v3389_v13  ;;  %vm4484_vm0 = vcmask 916480   ;;  %v1361_v57 = vadd.f32 %v1360_v42, %v1346_v28  ;;  %v2038_v28 = vld [vmem:[#allocation6 + $0x8] sm:$0xff] }
  0x6f   : > { %2920 = vmatprep.subr.bf16.mxu1 %v3305_v36  ;;  %v4476_v0 = vsel %vm3855_vm3, 4294967295, %v4475_v0  ;;  %vm4485_vm10 = vmmov %vm4484_vm0  ;;  %v808_v47 = vand.u32 1, %v406_v35  ;;  %v822_v60 = vand.u32 1, %v408_v52  ;;  %v829_v61 = vand.u32 1, %v409_v53 }
  0x70   : > { %v1718_v14 = vrot.slane %v1717_v63, 1  ;;  %v1540_v43 = vsel %vm4485_vm10, %v1521_v31, 0.0  ;;  %vm1212_vm10 = vcmp.eq.s32.totalorder %v794_v39, %v3389_v13  ;;  %v410_v62 = vadd.s32 480, %v3361_v3 }
  0x71   : > { %3048 = vmatpush3.bf16.msk.msra.mxu0 %vm3671_vm2, %v3304_v29  ;;  %vm1207_vm2 = vcmp.eq.s32.totalorder %v759_v59, %v3389_v13  ;;  %v1541_v56 = vrot.slane %v1540_v43, 4  ;;  %v4488_v59 = vmov 0  ;;  %v1362_v8 = vrot.slane %v1361_v57, 2 }
  0x72   : > { %3050 = vmatprep.subr.msk.bf16.mxu0 %vm3679_vm9, %v3304_v29  ;;  %2922 = vmatpush1.bf16.msk.msra.mxu1 %vm3855_vm3, %v3304_v29  ;;  %vm3871_vm8 = vmpackc.low %vm1207_vm2, %vm1206_vm4  ;;  %vm1209_vm9 = vcmp.eq.s32.totalorder %v773_v12, %v3389_v13  ;;  %v1719_v25 = vadd.f32 %v1718_v14, %v1717_v63  ;;  %vm1211_vm4 = vcmp.eq.s32.totalorder %v787_v23, %v3389_v13  ;;  %v411_v63 = vadd.s32 488, %v3361_v3 }
  0x73   : > { %2923 = vmatprep.subr.bf16.mxu1 %v3305_v36  ;;  %v4478_v18 = vsel %vm3871_vm8, 4294967295, %v4477_v18  ;;  %vm3894_vm2 = vmpackc.low %vm1209_vm9, %vm3876_vm12  ;;  %v1542_v4 = vadd.f32 %v1541_v56, %v1540_v43  ;;  %v4490_v9 = vmov 0  ;;  %v836_v3 = vand.u32 1, %v410_v62  ;;  %v1520_v56 = vld [vmem:[#allocation3 + $0x10] sm:$0xff]  ;;  %v2040_v62 = vld [vmem:[#allocation6 + $0x18] sm:$0xff] }
  0x74   : > { %v4483_v34 = vsel %vm3894_vm2, 4294967295, %v4482_v34  ;;  %v843_v11 = vand.u32 1, %v411_v63  ;;  %v1363_v14 = vadd.f32 %v1362_v8, %v1361_v57  ;;  %v2047_v31 = vrot.slane %v2038_v28, 4 }
  0x75   : > { %3052 = vmatpush3.bf16.msk.msra.mxu0 %vm3697_vm5, %v3304_v29  ;;  %vm4481_vm5 = vcmask 916480   ;;  %v1543_v12 = vrot.slane %v1542_v4, 2  ;;  %v1534_v57 = vrot.slane %v1520_v56, 4 }
  0x76   : > { %3053 = vmatprep.subr.bf16.mxu0 %v3305_v36  ;;  %2434 = vmatprep.mubr.msk.f32.mxu1 %vm4481_vm5, %v1372_v16  ;;  %vm1210_vm5 = vcmp.eq.s32.totalorder %v780_v22, %v3389_v13  ;;  %v1364_v19 = vrot.slane %v1363_v14, 1  ;;  %v4494_v22 = vmov 0  ;;  %v2048_v39 = vadd.f32 %v2047_v31, %v2038_v28 }
  0x77   : > { %2925 = vmatpush1.bf16.msk.msra.mxu1 %vm3871_vm8, %v3304_v29  ;;  %vm3912_vm9 = vmpackc.low %vm1211_vm4, %vm1210_vm5  ;;  %vm1214_vm5 = vcmp.eq.s32.totalorder %v808_v47, %v3389_v13  ;;  %vm1215_vm4 = vcmp.eq.s32.totalorder %v815_v54, %v3389_v13  ;;  %v1544_v16 = vadd.f32 %v1543_v12, %v1542_v4  ;;  %v1535_v4 = vadd.f32 %v1534_v57, %v1520_v56 }
  0x78   : > { %1788 = vmatmul.mubr.f32.vlgmr.msra.gmra.mrb[2].mxu0 %v1700_v15  ;;  %2926 = vmatprep.subr.bf16.mxu1 %v3305_v36  ;;  %v4487_v45 = vsel %vm3912_vm9, 4294967295, %v4486_v45  ;;  %v4492_v15 = vmov 0  ;;  %v2049_v41 = vrot.slane %v2048_v39, 2 }
  0x79   : > { %3055 = vmatpush1.bf16.msk.msra.mxu0 %vm3718_vm15, %v3304_v29  ;;  %2560 = vmatprep.mubr.msk.f32.mxu0 %vm4484_vm0, %v1719_v25  ;;  %vm1213_vm0 = vcmp.eq.s32.totalorder %v801_v40, %v3389_v13  ;;  %v1545_v23 = vrot.slane %v1544_v16, 1  ;;  %v1707_v25 = vrot.slane %v1693_v24, 4 }
  0x7a   : > { %3056 = vmatprep.subr.bf16.mxu0 %v3305_v36  ;;  %vm3928_vm12 = vmpackc.low %vm1213_vm0, %vm1212_vm10  ;;  %vm1216_vm0 = vcmp.eq.s32.totalorder %v822_v60, %v3389_v13  ;;  %v2050_v43 = vadd.f32 %v2049_v41, %v2048_v39  ;;  %v1865_v60 = vld [vmem:[#allocation5 + $0x8] sm:$0xff] }
  0x7b   : > { %2928 = vmatpush1.bf16.msk.msra.mxu1 %vm3894_vm2, %v3304_v29  ;;  %v4489_v59 = vsel %vm3928_vm12, 4294967295, %v4488_v59  ;;  %vm3944_vm10 = vmpackc.low %vm1215_vm4, %vm1214_vm5  ;;  %vm1218_vm4 = vcmp.eq.s32.totalorder %v836_v3, %v3389_v13  ;;  %v1546_v1 = vadd.f32 %v1545_v23, %v1544_v16  ;;  %v1708_v35 = vadd.f32 %v1707_v25, %v1693_v24 }
  0x7c   : > { %2929 = vmatprep.subr.bf16.mxu1 %v3305_v36  ;;  %v4491_v9 = vsel %vm3944_vm10, 4294967295, %v4490_v9  ;;  %v2051_v52 = vrot.slane %v2050_v43, 1  ;;  %v1874_v63 = vrot.slane %v1865_v60, 4 }
  0x7d   : > { %3058 = vmatpush1.bf16.msk.msra.mxu0 %vm3739_vm11, %v3304_v29  ;;  %v1709_v40 = vrot.slane %v1708_v35, 2 }
  0x7e   : > { %3059 = vmatprep.subr.bf16.mxu0 %v3305_v36  ;;  %v2052_v54 = vadd.f32 %v2051_v52, %v2050_v43  ;;  %v1867_v52 = vld [vmem:[#allocation5 + $0x18] sm:$0xff] }
  0x7f   : > { %2931 = vmatpush1.bf16.msk.msra.mxu1 %vm3912_vm9, %v3304_v29  ;;  %vm1217_vm9 = vcmp.eq.s32.totalorder %v829_v61, %v3389_v13  ;;  %v1710_v42 = vadd.f32 %v1709_v40, %v1708_v35  ;;  %v2037_v61 = vld [vmem:[#allocation6] sm:$0xff] }
  0x80   : > { %2932 = vmatprep.subr.bf16.mxu1 %v3305_v36  ;;  %vm3958_vm5 = vmpackc.low %vm1217_vm9, %vm1216_vm0  ;;  %vm4497_vm0 = vnez %v4487_v45  ;;  %v2041_v8 = vrot.slane %v2037_v61, 4 }
  0x81   : > { %3061 = vmatpush1.bf16.msk.msra.mxu0 %vm3757_vm1, %v3304_v29  ;;  %v4493_v15 = vsel %vm3958_vm5, 4294967295, %v4492_v15  ;;  %v1711_v47 = vrot.slane %v1710_v42, 1 }
  0x82   : > { %3062 = vmatprep.subr.bf16.mxu0 %v3305_v36  ;;  %v2042_v16 = vadd.f32 %v2041_v8, %v2037_v61 }
  0x83   : > { %2934 = vmatpush1.bf16.msk.msra.mxu1 %vm3928_vm12, %v3304_v29  ;;  %vm1219_vm12 = vcmp.eq.s32.totalorder %v843_v11, %v3389_v13  ;;  %v1365_v13 = vadd.f32 %v1364_v19, %v1363_v14  ;;  %v1712_v53 = vadd.f32 %v1711_v47, %v1710_v42  ;;  %v1875_v11 = vadd.f32 %v1874_v63, %v1865_v60 }
  0x84   : > { %2935 = vmatprep.subr.bf16.mxu1 %v3305_v36  ;;  %vm3972_vm9 = vmpackc.low %vm1219_vm12, %vm1218_vm4  ;;  %vm4496_vm12 = vcmask 916480   ;;  %vm4498_vm4 = vnez %v4489_v59  ;;  %v1536_v14 = vrot.slane %v1535_v4, 2 }
  0x85   : > { %3064 = vmatpush1.bf16.msk.msra.mxu0 %vm3775_vm6, %v3304_v29  ;;  %v4495_v22 = vsel %vm3972_vm9, 4294967295, %v4494_v22  ;;  %v1876_v19 = vrot.slane %v1875_v11, 2 }
  0x86   : > { %3065 = vmatprep.subr.bf16.mxu0 %v3305_v36 }
  0x87   : > { %2937 = vmatpush1.bf16.msk.msra.mxu1 %vm3944_vm10, %v3304_v29  ;;  %v1877_v24 = vadd.f32 %v1876_v19, %v1875_v11 }
  0x88   : > { %2938 = vmatprep.subr.bf16.mxu1 %v3305_v36 }
  0x89   : > { %3067 = vmatpush1.bf16.msk.msra.mxu0 %vm3793_vm7, %v3304_v29  ;;  %v1878_v35 = vrot.slane %v1877_v24, 1 }
  0x8a   : > { %3068 = vmatprep.subr.bf16.mxu0 %v3305_v36 }
  0x8b   : > { %2940 = vmatpush1.bf16.msk.msra.mxu1 %vm3958_vm5, %v3304_v29  ;;  %v1879_v42 = vadd.f32 %v1878_v35, %v1877_v24 }
  0x8c   : > { %2941 = vmatprep.subr.bf16.mxu1 %v3305_v36 }
  0x8d   : > { %3070 = vmatpush1.bf16.msk.msra.mxu0 %vm3813_vm14, %v3304_v29 }
  0x8e   : > { %3071 = vmatprep.subr.bf16.mxu0 %v3305_v36 }
  0x8f   : > { %2943 = vmatpush1.bf16.msk.msra.mxu1 %vm3972_vm9, %v3304_v29 }
  0x90   : > { %2976 = vmatprep.subr.bf16.mxu1 %v3305_v36 }
  0x91   : > { %3073 = vmatpush1.bf16.msk.msra.mxu0 %vm3831_vm13, %v3304_v29 }
  0x92   : > { %3074 = vmatprep.subr.bf16.mxu0 %v3305_v36  ;;  %1511 = vmatmul.mubr.f32.vlgmr.msra.gmra.mrb[2].mxu1 %v1365_v13  ;;  %v1537_v13 = vadd.f32 %v1536_v14, %v1535_v4 }
  0x93   : > { %2978 = vmatpush1.bf16.msk.msra.mxu1 %vm3718_vm15, %v3304_v29  ;;  %2497 = vmatprep.mubr.msk.f32.mxu1 %vm4496_vm12, %v1546_v1  ;;  %vm4499_vm12 = vnez %v4391_v27  ;;  %v2043_v1 = vrot.slane %v2042_v16, 2 }
  0x94   : > { %2979 = vmatprep.subr.bf16.mxu1 %v3305_v36  ;;  %v1538_v28 = vrot.slane %v1537_v13, 1 }
  0x95   : > { %3076 = vmatpush1.bf16.msk.msra.mxu0 %vm3855_vm3, %v3304_v29  ;;  %v2044_v31 = vadd.f32 %v2043_v1, %v2042_v16 }
  0x96   : > { %3077 = vmatprep.subr.bf16.mxu0 %v3305_v36  ;;  %v1539_v40 = vadd.f32 %v1538_v28, %v1537_v13 }
  0x97   : > { %2981 = vmatpush1.bf16.msk.msra.mxu1 %vm3739_vm11, %v3304_v29  ;;  %v2045_v41 = vrot.slane %v2044_v31, 1 }
  0x98   : > { %2982 = vmatprep.subr.bf16.mxu1 %v3305_v36 }
  0x99   : > { %3079 = vmatpush1.bf16.msk.msra.mxu0 %vm3871_vm8, %v3304_v29  ;;  %v2046_v47 = vadd.f32 %v2045_v41, %v2044_v31 }
  0x9a   : > { %3080 = vmatprep.subr.bf16.mxu0 %v3305_v36 }
  0x9b   : > { %2984 = vmatpush1.bf16.msk.msra.mxu1 %vm3757_vm1, %v3304_v29  ;;  %vm4510_vm1 = vnez %v4423_v26 }
  0x9c   : > { %2985 = vmatprep.subr.bf16.mxu1 %v3305_v36 }
  0x9d   : > { %3082 = vmatpush1.bf16.msk.msra.mxu0 %vm3894_vm2, %v3304_v29 }
  0x9e   : > { %3083 = vmatprep.subr.bf16.mxu0 %v3305_v36 }
  0x9f   : > { %2987 = vmatpush1.bf16.msk.msra.mxu1 %vm3775_vm6, %v3304_v29  ;;  %vm4506_vm6 = vnez %v4407_v55 }
  0xa0   : > { %2988 = vmatprep.subr.bf16.mxu1 %v3305_v36 }
  0xa1   : > { %3085 = vmatpush1.bf16.msk.msra.mxu0 %vm4497_vm0, %v3304_v29 }
  0xa2   : > { %3086 = vmatprep.subr.bf16.mxu0 %v3305_v36 }
  0xa3   : > { %2990 = vmatpush1.bf16.msk.msra.mxu1 %vm3793_vm7, %v3304_v29  ;;  %vm4504_vm7 = vcmask 916480  }
  0xa4   : > { %2991 = vmatprep.subr.bf16.mxu1 %v3305_v36  ;;  %v2059_v3 = vsel %vm4504_vm7, %v2040_v62, 0.0  ;;  %vm4507_vm7 = vnez %v4409_v5 }
  0xa5   : > { %3088 = vmatpush1.bf16.msk.msra.mxu0 %vm4498_vm4, %v3304_v29  ;;  %v2060_v12 = vrot.slane %v2059_v3, 4 }
  0xa6   : > { %3089 = vmatprep.subr.bf16.mxu0 %v3305_v36 }
  0xa7   : > { %2993 = vmatpush1.bf16.msk.msra.mxu1 %vm3813_vm14, %v3304_v29  ;;  %vm4503_vm14 = vnez %v4399_v48  ;;  %v2061_v23 = vadd.f32 %v2060_v12, %v2059_v3 }
  0xa8   : > { %2994 = vmatprep.subr.bf16.mxu1 %v3305_v36 }
  0xa9   : > { %3091 = vmatpush1.bf16.msk.msra.mxu0 %vm3944_vm10, %v3304_v29  ;;  %v2062_v25 = vrot.slane %v2061_v23, 2 }
  0xaa   : > { %3092 = vmatprep.subr.bf16.mxu0 %v3305_v36 }
  0xab   : > { %2996 = vmatpush1.bf16.msk.msra.mxu1 %vm3831_vm13, %v3304_v29  ;;  %vm4500_vm13 = vnez %v4393_v30  ;;  %v2063_v39 = vadd.f32 %v2062_v25, %v2061_v23  ;;  %v1864_v30 = vld [vmem:[#allocation5] sm:$0xff] }
  0xac   : > { %2997 = vmatprep.subr.bf16.mxu1 %v3305_v36 }
  0xad   : > { %3094 = vmatpush1.bf16.msk.msra.mxu0 %vm3958_vm5, %v3304_v29  ;;  %v2064_v43 = vrot.slane %v2063_v39, 1 }
  0xae   : > { %3095 = vmatprep.subr.bf16.mxu0 %v3305_v36 }
  0xaf   : > { %2999 = vmatpush1.bf16.msk.msra.mxu1 %vm3855_vm3, %v3304_v29  ;;  %vm4501_vm3 = vnez %v4395_v33  ;;  %v2065_v27 = vadd.f32 %v2064_v43, %v2063_v39  ;;  %v1868_v33 = vrot.slane %v1864_v30, 4 }
  0xb0   : > { %3000 = vmatprep.subr.bf16.mxu1 %v3305_v36 }
  0xb1   : > { %3097 = vmatpush1.bf16.msk.msra.mxu0 %vm3972_vm9, %v3304_v29  ;;  %v1869_v48 = vadd.f32 %v1868_v33, %v1864_v30 }
  0xb2   : > { %3176 = vmatprep.subr.msk.bf16.mxu0 %vm4499_vm12, %v3304_v29 }
  0xb3   : > { %3002 = vmatpush1.bf16.msk.msra.mxu1 %vm3871_vm8, %v3304_v29  ;;  %vm4502_vm8 = vnez %v4397_v38  ;;  %v1870_v55 = vrot.slane %v1869_v48, 2 }
  0xb4   : > { %1858 = vmatmul.mubr.f32.vlgmr.msra.gmra.mrb[4].mxu0 %v1712_v53  ;;  %3003 = vmatprep.subr.bf16.mxu1 %v3305_v36 }
  0xb5   : > { %3178 = vmatpush3.bf16.msk.msra.mxu0 %vm4500_vm13, %v3304_v29  ;;  %2133 = vmatprep.mubr.f32.mxu0 %v2052_v54 }
  0xb6   : > { %3180 = vmatprep.subr.msk.bf16.mxu0 %vm4501_vm3, %v3304_v29 }
  0xb7   : > { %3005 = vmatpush1.bf16.msk.msra.mxu1 %vm3894_vm2, %v3304_v29  ;;  %vm4505_vm2 = vnez %v4401_v50 }
  0xb8   : > { %3006 = vmatprep.subr.bf16.mxu1 %v3305_v36 }
  0xb9   : > { %3182 = vmatpush3.bf16.msk.msra.mxu0 %vm4502_vm8, %v3304_v29 }
  0xba   : > { %3184 = vmatprep.subr.msk.bf16.mxu0 %vm4503_vm14, %v3304_v29 }
  0xbb   : > { %3008 = vmatpush1.bf16.msk.msra.mxu1 %vm4497_vm0, %v3304_v29  ;;  %vm4508_vm0 = vnez %v4413_v7  ;;  %v1871_v7 = vadd.f32 %v1870_v55, %v1869_v48 }
  0xbc   : > { %3009 = vmatprep.subr.bf16.mxu1 %v3305_v36 }
  0xbd   : > { %3186 = vmatpush3.bf16.msk.msra.mxu0 %vm4505_vm2, %v3304_v29  ;;  %v1872_v26 = vrot.slane %v1871_v7, 1 }
  0xbe   : > { %3188 = vmatprep.subr.msk.bf16.mxu0 %vm4506_vm6, %v3304_v29 }
  0xbf   : > { %3011 = vmatpush1.bf16.msk.msra.mxu1 %vm4498_vm4, %v3304_v29  ;;  %vm4509_vm4 = vnez %v4421_v21 }
  0xc0   : > { %3012 = vmatprep.subr.bf16.mxu1 %v3305_v36 }
  0xc1   : > { %3190 = vmatpush3.bf16.msk.msra.mxu0 %vm4507_vm7, %v3304_v29 }
  0xc2   : > { %3192 = vmatprep.subr.msk.bf16.mxu0 %vm4508_vm0, %v3304_v29 }
  0xc3   : > { %3014 = vmatpush1.bf16.msk.msra.mxu1 %vm3944_vm10, %v3304_v29  ;;  %vm4511_vm10 = vnez %v4435_v44 }
  0xc4   : > { %3015 = vmatprep.subr.bf16.mxu1 %v3305_v36 }
  0xc5   : > { %3194 = vmatpush3.bf16.msk.msra.mxu0 %vm4509_vm4, %v3304_v29  ;;  %vm4512_vm4 = vnez %v4439_v51  ;;  %v1873_v51 = vadd.f32 %v1872_v26, %v1871_v7 }
  0xc6   : > { %3196 = vmatprep.subr.msk.bf16.mxu0 %vm4510_vm1, %v3304_v29 }
  0xc7   : > { %3017 = vmatpush1.bf16.msk.msra.mxu1 %vm3958_vm5, %v3304_v29  ;;  %vm4513_vm5 = vnez %v4445_v2 }
  0xc8   : > { %3018 = vmatprep.subr.bf16.mxu1 %v3305_v36 }
  0xc9   : > { %3198 = vmatpush3.bf16.msk.msra.mxu0 %vm4511_vm10, %v3304_v29  ;;  %vm4514_vm10 = vnez %v4447_v10  ;;  %v2039_v10 = vld [vmem:[#allocation6 + $0x10] sm:$0xff] }
  0xca   : > { %3200 = vmatprep.subr.msk.bf16.mxu0 %vm4512_vm4, %v3304_v29 }
  0xcb   : > { %3020 = vmatpush1.bf16.msk.msra.mxu1 %vm3972_vm9, %v3304_v29  ;;  %vm4515_vm9 = vnez %v4449_v20  ;;  %v2053_v20 = vrot.slane %v2039_v10, 4 }
  0xcc   : > { %3099 = vmatprep.subr.msk.bf16.mxu1 %vm4499_vm12, %v3304_v29  ;;  %vm4530_vm12 = vnez %v4489_v59 }
  0xcd   : > { %3202 = vmatpush3.bf16.msk.msra.mxu0 %vm4513_vm5, %v3304_v29  ;;  %v2054_v37 = vadd.f32 %v2053_v20, %v2039_v10 }
  0xce   : > { %3204 = vmatprep.subr.msk.bf16.mxu0 %vm4514_vm10, %v3304_v29  ;;  %1685 = vmatmul.mubr.f32.vlgmr.msra.gmra.mrb[4].mxu1 %v1539_v40 }
  0xcf   : > { %3101 = vmatpush3.bf16.msk.msra.mxu1 %vm4500_vm13, %v3304_v29  ;;  %1960 = vmatprep.mubr.f32.mxu1 %v1879_v42  ;;  %vm4516_vm13 = vcmask 916480   ;;  %v2055_v46 = vrot.slane %v2054_v37, 2 }
  0xd0   : > { %3103 = vmatprep.subr.msk.bf16.mxu1 %vm4501_vm3, %v3304_v29  ;;  %vm4517_vm3 = vmmov %vm4516_vm13 }
  0xd1   : > { %3206 = vmatpush3.bf16.msk.msra.mxu0 %vm4515_vm9, %v3304_v29  ;;  %v1886_v53 = vsel %vm4517_vm3, %v1867_v52, 0.0 }
  0xd2   : > { %3207 = vmatprep.subr.bf16.mxu0 %v3305_v36  ;;  %v1887_v38 = vrot.slane %v1886_v53, 4 }
  0xd3   : > { %3105 = vmatpush3.bf16.msk.msra.mxu1 %vm4502_vm8, %v3304_v29  ;;  %vm4520_vm8 = vnez %v4459_v6 }
  0xd4   : > { %2134 = vmatmul.mubr.f32.vlgmr.msra.gmra.mrb[6].mxu0 %v2046_v47  ;;  %3107 = vmatprep.subr.msk.bf16.mxu1 %vm4503_vm14, %v3304_v29  ;;  %vm4518_vm14 = vnez %v4457_v58  ;;  %v1888_v50 = vadd.f32 %v1887_v38, %v1886_v53  ;;  %v2056_v58 = vadd.f32 %v2055_v46, %v2054_v37 }
  0xd5   : > { %3209 = vmatpush1.bf16.msk.msra.mxu0 %vm3718_vm15, %v3304_v29  ;;  %2686 = vmatprep.mubr.msk.f32.mxu0 %vm4516_vm13, %v2065_v27  ;;  %vm4532_vm13 = vnez %v4493_v15 }
  0xd6   : > { %3210 = vmatprep.subr.bf16.mxu0 %v3305_v36  ;;  %v1889_v5 = vrot.slane %v1888_v50, 2  ;;  %v2057_v6 = vrot.slane %v2056_v58, 1 }
  0xd7   : > { %3109 = vmatpush3.bf16.msk.msra.mxu1 %vm4505_vm2, %v3304_v29  ;;  %vm4521_vm2 = vnez %v4435_v44 }
  0xd8   : > { %3111 = vmatprep.subr.msk.bf16.mxu1 %vm4506_vm6, %v3304_v29  ;;  %vm4519_vm6 = vnez %v4421_v21  ;;  %v1890_v21 = vadd.f32 %v1889_v5, %v1888_v50 }
  0xd9   : > { %3212 = vmatpush1.bf16.msk.msra.mxu0 %vm3739_vm11, %v3304_v29 }
  0xda   : > { %3213 = vmatprep.subr.bf16.mxu0 %v3305_v36  ;;  %v1891_v44 = vrot.slane %v1890_v21, 1 }
  0xdb   : > { %3113 = vmatpush3.bf16.msk.msra.mxu1 %vm4507_vm7, %v3304_v29  ;;  %vm4531_vm7 = vnez %v4491_v9 }
  0xdc   : > { %3115 = vmatprep.subr.msk.bf16.mxu1 %vm4508_vm0, %v3304_v29  ;;  %vm4522_vm0 = vnez %v4462_v17  ;;  %v1892_v2 = vadd.f32 %v1891_v44, %v1890_v21  ;;  %v2058_v17 = vadd.f32 %v2057_v6, %v2056_v58 }
  0xdd   : > { %3215 = vmatpush1.bf16.msk.msra.mxu0 %vm4518_vm14, %v3304_v29 }
  0xde   : > { %3216 = vmatprep.subr.bf16.mxu0 %v3305_v36 }
  0xdf   : > { %3117 = vmatpush3.bf16.msk.msra.mxu1 %vm4519_vm6, %v3304_v29 }
  0xe0   : > { %3119 = vmatprep.subr.msk.bf16.mxu1 %vm4510_vm1, %v3304_v29  ;;  %vm4523_vm1 = vnez %v4468_v32  ;;  %v1866_v32 = vld [vmem:[#allocation5 + $0x10] sm:$0xff] }
  0xe1   : > { %3218 = vmatpush1.bf16.msk.msra.mxu0 %vm4520_vm8, %v3304_v29 }
  0xe2   : > { %3219 = vmatprep.subr.bf16.mxu0 %v3305_v36 }
  0xe3   : > { %3121 = vmatpush3.bf16.msk.msra.mxu1 %vm4521_vm2, %v3304_v29 }
  0xe4   : > { %3123 = vmatprep.subr.msk.bf16.mxu1 %vm4512_vm4, %v3304_v29  ;;  %vm4524_vm4 = vnez %v4472_v49  ;;  %v1880_v49 = vrot.slane %v1866_v32, 4 }
  0xe5   : > { %3221 = vmatpush1.bf16.msk.msra.mxu0 %vm4522_vm0, %v3304_v29 }
  0xe6   : > { %3222 = vmatprep.subr.bf16.mxu0 %v3305_v36 }
  0xe7   : > { %3125 = vmatpush3.bf16.msk.msra.mxu1 %vm4513_vm5, %v3304_v29  ;;  %vm4526_vm5 = vmmov %vm4517_vm3  ;;  %vm4533_vm3 = vnez %v4495_v22 }
  0xe8   : > { %3127 = vmatprep.subr.msk.bf16.mxu1 %vm4514_vm10, %v3304_v29  ;;  %vm4525_vm10 = vnez %v4476_v0  ;;  %v1881_v0 = vadd.f32 %v1880_v49, %v1866_v32 }
  0xe9   : > { %3224 = vmatpush1.bf16.msk.msra.mxu0 %vm4523_vm1, %v3304_v29 }
  0xea   : > { %3225 = vmatprep.subr.bf16.mxu0 %v3305_v36  ;;  %v1882_v54 = vrot.slane %v1881_v0, 2 }
  0xeb   : > { %3129 = vmatpush3.bf16.msk.msra.mxu1 %vm4515_vm9, %v3304_v29  ;;  %vm4527_vm9 = vnez %v4478_v18 }
  0xec   : > { %3130 = vmatprep.subr.bf16.mxu1 %v3305_v36  ;;  %v1883_v18 = vadd.f32 %v1882_v54, %v1881_v0 }
  0xed   : > { %3227 = vmatpush1.bf16.msk.msra.mxu0 %vm4524_vm4, %v3304_v29 }
  0xee   : > { %3228 = vmatprep.subr.bf16.mxu0 %v3305_v36  ;;  %1961 = vmatmul.mubr.f32.vlgmr.msra.gmra.mrb[6].mxu1 %v1873_v51 }
  0xef   : > { %3132 = vmatpush1.bf16.msk.msra.mxu1 %vm3718_vm15, %v3304_v29  ;;  %2623 = vmatprep.mubr.msk.f32.mxu1 %vm4526_vm5, %v1892_v2  ;;  %vm4528_vm15 = vnez %v4483_v34  ;;  %v1884_v34 = vrot.slane %v1883_v18, 1 }
  0xf0   : > { %3133 = vmatprep.subr.bf16.mxu1 %v3305_v36 }
  0xf1   : > { %3230 = vmatpush1.bf16.msk.msra.mxu0 %vm4525_vm10, %v3304_v29 }
  0xf2   : > { %3231 = vmatprep.subr.bf16.mxu0 %v3305_v36 }
  0xf3   : > { %3135 = vmatpush1.bf16.msk.msra.mxu1 %vm3739_vm11, %v3304_v29  ;;  %vm4529_vm11 = vnez %v4487_v45  ;;  %v1885_v45 = vadd.f32 %v1884_v34, %v1883_v18 }
  0xf4   : > { %3136 = vmatprep.subr.bf16.mxu1 %v3305_v36 }
  0xf5   : > { %3233 = vmatpush1.bf16.msk.msra.mxu0 %vm4527_vm9, %v3304_v29 }
  0xf6   : > { %3234 = vmatprep.subr.bf16.mxu0 %v3305_v36 }
  0xf7   : > { %3138 = vmatpush1.bf16.msk.msra.mxu1 %vm4518_vm14, %v3304_v29  ;;  %vm1516_vm14 = vcmask 8192  }
  0xf8   : > { %3139 = vmatprep.subr.bf16.mxu1 %v3305_v36 }
  0xf9   : > { %3236 = vmatpush1.bf16.msk.msra.mxu0 %vm4528_vm15, %v3304_v29 }
  0xfa   : > { %3237 = vmatprep.subr.bf16.mxu0 %v3305_v36 }
  0xfb   : > { %3141 = vmatpush1.bf16.msk.msra.mxu1 %vm4520_vm8, %v3304_v29 }
  0xfc   : > { %3142 = vmatprep.subr.bf16.mxu1 %v3305_v36 }
  0xfd   : > { %3239 = vmatpush1.bf16.msk.msra.mxu0 %vm4529_vm11, %v3304_v29 }
  0xfe   : > { %3240 = vmatprep.subr.bf16.mxu0 %v3305_v36 }
  0xff   : > { %3144 = vmatpush1.bf16.msk.msra.mxu1 %vm4522_vm0, %v3304_v29 }
 0x100   : > { %3145 = vmatprep.subr.bf16.mxu1 %v3305_v36 }
 0x101   : > { %3242 = vmatpush1.bf16.msk.msra.mxu0 %vm4530_vm12, %v3304_v29 }
 0x102   : > { %3243 = vmatprep.subr.bf16.mxu0 %v3305_v36 }
 0x103   : > { %3147 = vmatpush1.bf16.msk.msra.mxu1 %vm4523_vm1, %v3304_v29 }
 0x104   : > { %3148 = vmatprep.subr.bf16.mxu1 %v3305_v36 }
 0x105   : > { %3245 = vmatpush1.bf16.msk.msra.mxu0 %vm4531_vm7, %v3304_v29 }
 0x106   : > { %3246 = vmatprep.subr.bf16.mxu0 %v3305_v36 }
 0x107   : > { %3150 = vmatpush1.bf16.msk.msra.mxu1 %vm4524_vm4, %v3304_v29 }
 0x108   : > { %3151 = vmatprep.subr.bf16.mxu1 %v3305_v36 }
 0x109   : > { %3248 = vmatpush1.bf16.msk.msra.mxu0 %vm4532_vm13, %v3304_v29 }
 0x10a   : > { %3249 = vmatprep.subr.bf16.mxu0 %v3305_v36 }
 0x10b   : > { %3153 = vmatpush1.bf16.msk.msra.mxu1 %vm4525_vm10, %v3304_v29 }
 0x10c   : > { %3154 = vmatprep.subr.bf16.mxu1 %v3305_v36 }
 0x10d   : > { %3251 = vmatpush1.bf16.msk.msra.mxu0 %vm4533_vm3, %v3304_v29 }
 0x10f   : > { %3156 = vmatpush1.bf16.msk.msra.mxu1 %vm4527_vm9, %v3304_v29 }
 0x110   : > { %2204 = vmatmul.mubr.f32.vlgmr.msra.gmra.mrb[8].mxu0 %v2058_v17  ;;  %3157 = vmatprep.subr.bf16.mxu1 %v3305_v36 }
 0x113   : > { %3159 = vmatpush1.bf16.msk.msra.mxu1 %vm4528_vm15, %v3304_v29 }
 0x114   : > { %3160 = vmatprep.subr.bf16.mxu1 %v3305_v36 }
 0x117   : > { %3162 = vmatpush1.bf16.msk.msra.mxu1 %vm4529_vm11, %v3304_v29 }
 0x118   : > { %3163 = vmatprep.subr.bf16.mxu1 %v3305_v36 }
 0x11b   : > { %3165 = vmatpush1.bf16.msk.msra.mxu1 %vm4530_vm12, %v3304_v29 }
 0x11c   : > { %3166 = vmatprep.subr.bf16.mxu1 %v3305_v36 }
 0x11f   : > { %3168 = vmatpush1.bf16.msk.msra.mxu1 %vm4531_vm7, %v3304_v29 }
 0x120   : > { %3169 = vmatprep.subr.bf16.mxu1 %v3305_v36 }
 0x123   : > { %3171 = vmatpush1.bf16.msk.msra.mxu1 %vm4532_vm13, %v3304_v29 }
 0x124   : > { %3172 = vmatprep.subr.bf16.mxu1 %v3305_v36 }
 0x127   : > { %3174 = vmatpush1.bf16.msk.msra.mxu1 %vm4533_vm3, %v3304_v29 }
 0x128   : > { %v2724_v59 = vpop.f32.mrb[0].mxu1 }
 0x129   : > { %v2725_v57 = vpop.f32.mrb[1].mxu1 }
 0x12a   : > { %2031 = vmatmul.mubr.f32.vlgmr.msra.gmra.mrb[8].mxu1 %v1885_v45  ;;  %v2726_v60 = vadd.f32 %v2725_v57, %v2724_v59 }
 0x12b   : > { %v2759_v56 = vpop.f32.mrb[0].mxu0 }
 0x12c   : > { %v2760_v9 = vpop.f32.mrb[1].mxu0 }
 0x12d   : > { %v2761_v61 = vadd.f32 %v2760_v9, %v2759_v56 }
 0x14b   : > { %v2794_v62 = vpop.f32.mrb[2].mxu0 }
 0x14c   : > { %v2795_v63 = vpop.f32.mrb[3].mxu0 }
 0x14d   : > { %v2796_v4 = vadd.f32 %v2795_v63, %v2794_v62 }
 0x165   : > { %v1512_v8 = vpop.f32.mrb[2].mxu1 }
 0x166   : > { %v1513_v15 = vadd.f32 %v2726_v60, %v1512_v8  ;;  %v1514_v3 = vpop.f32.mrb[3].mxu1 }
 0x168   : > { %1517 = vst.msk [vmem:[%s4326_s2] sm:$0x1] %vm1516_vm14, %v1513_v15 }
 0x187   : > { %v1859_v29 = vpop.f32.mrb[4].mxu0 }
 0x188   : > { %v1860_v36 = vadd.f32 %v2796_v4, %v1859_v29  ;;  %v1861_v22 = vpop.f32.mrb[5].mxu0 }
 0x18a   : > { %1863 = vst.msk [vmem:[%s4326_s2 + $0x2] sm:$0x1] %vm1516_vm14, %v1860_v36 }
 0x1a1   : > { %v1686_v11 = vpop.f32.mrb[4].mxu1 }
 0x1a2   : > { %v1687_v12 = vadd.f32 %v2761_v61, %v1686_v11  ;;  %v1688_v14 = vpop.f32.mrb[5].mxu1 }
 0x1a4   : > { %1690 = vst.msk [vmem:[%s4326_s2 + $0x1] sm:$0x1] %vm1516_vm14, %v1687_v12 }
 0x1a7   : > { %v2864_v16 = vpop.f32.mrb[6].mxu0 }
 0x1a8   : > { %v2865_v19 = vpop.f32.mrb[7].mxu0 }
 0x1a9   : > { %v2866_v23 = vadd.f32 %v2865_v19, %v2864_v16 }
 0x1c1   : > { %v2829_v13 = vpop.f32.mrb[6].mxu1 }
 0x1c2   : > { %v2830_v1 = vpop.f32.mrb[7].mxu1 }
 0x1c3   : > { %v2831_v24 = vadd.f32 %v2830_v1, %v2829_v13 }
 0x1e3   : > { %v2205_v25 = vpop.f32.mrb[8].mxu0 }
 0x1e4   : > { %v2206_v28 = vadd.f32 %v2866_v23, %v2205_v25  ;;  %v2207_v31 = vpop.f32.mrb[9].mxu0 }
 0x1e6   : > { %2209 = vst.msk [vmem:[%s4326_s2 + $0x4] sm:$0x1] %vm1516_vm14, %v2206_v28 }
 0x1fd   : > { %v2032_v35 = vpop.f32.mrb[8].mxu1 }
 0x1fe   : > { %v2033_v39 = vadd.f32 %v2831_v24, %v2032_v35  ;;  %v2034_v40 = vpop.f32.mrb[9].mxu1 }
 0x200   : > { %2036 = vst.msk [vmem:[%s4326_s2 + $0x3] sm:$0x1] %vm1516_vm14, %v2033_v39 }
 0x201 PF: > { %s12_s11 = sadd.s32 1, %s3301_s11   ;;  %s4534_s9 = smov %s3297_s10 }
 0x202   : > { %p9_p7 = scmp.ge.s32.totalorder %s12_s11, 6   ;;  %s4535_s10 = smov %s4537_s12 }
 0x204   :  { %11 = sbr.rel (!%p9_p7) target bundleno = 2 (0x2), region = 71 }

</bundles_post_ra>
